<compile_context>
chip_gen: v5e
topology: v5e:2x2
jax: 0.10.0
libtpu: 0.0.40
codegen_flags: <defaults>
</compile_context>

<pallas_src>
import functools

import jax
import jax.numpy as jnp
import numpy as np
from jax import lax
from jax.experimental import pallas as pl
from jax.experimental.pallas import tpu as pltpu

# Small, module-consistent hyper-parameters.
INPUT_DIM = 1          # forward slices one column per asset -> LSTM input_size == 1
HIDDEN_DIM = 32
EMBED_DIM = 8
NUM_LAYERS = 2
NUM_ASSETS = 4
SEQ_LENGTH = 8
RANK_SIZE = 4


def _softplus(x):
    # nn.Softplus(beta=1), numerically stable.
    return jnp.maximum(x, 0.0) + jnp.log(1.0 + jnp.exp(-jnp.abs(x)))


def _gp_copula_kernel(x_ref, emb_ref, w_ih0_ref, w_hh0_ref, w_cat_ref,
                      b_lstm_ref, w_ph_ref, w_pe_ref, b_proj_ref,
                      proj_ref, h_out_ref, c_out_ref,
                      *, seq_length, num_layers, hidden_dim):
    H = hidden_dim
    L = num_layers
    S = seq_length
    N = emb_ref.shape[0]

    # ---- hoisted, loop-invariant loads / compute (once per call) ------------
    w_ih0 = w_ih0_ref[...]                               # (1, 4H) layer-0 W_ih^T
    w_hh0 = w_hh0_ref[...]                               # (H, 4H) layer-0 W_hh^T
    w_cats = [w_cat_ref[l] for l in range(L - 1)]        # (2H, 4H) fused per upper layer
    b_list = [b_lstm_ref[l] for l in range(L)]           # (1, 4H) per layer (b_ih + b_hh)
    w_ph = w_ph_ref[...]                                 # (H, 2+R) fused [m|d|v] heads
    # time-invariant part of the projection: emb @ W_e + b
    proj_base = (jnp.dot(emb_ref[...], w_pe_ref[...],
                         preferred_element_type=jnp.float32)
                 + b_proj_ref[...])                      # (N, 2+R)

    zeros = jnp.zeros((N, H), jnp.float32)
    init = (tuple(zeros for _ in range(L)),              # h per layer
            tuple(zeros for _ in range(L)))              # c per layer

    def step(t, carry):
        hs, cs = carry
        x_col = x_ref[t]                                 # (N, 1) value at time t
        new_hs, new_cs = [], []
        layer_in = None
        for l in range(L):
            h_prev = hs[l]
            c_prev = cs[l]
            if l == 0:
                # layer-0 input_size == 1 -> outer product on the VPU (exact f32)
                gates = x_col * w_ih0 + jnp.dot(h_prev, w_hh0,
                                                preferred_element_type=jnp.float32)
            else:
                # fused input+recurrent matmul: [h_below | h_prev] @ [W_ih^T ; W_hh^T]
                xi = jnp.concatenate([layer_in, h_prev], axis=-1)    # (N, 2H)
                gates = jnp.dot(xi, w_cats[l - 1],
                                preferred_element_type=jnp.float32)
            gates = gates + b_list[l]                    # (N, 4H), gate order i|f|g|o
            i_g = jax.nn.sigmoid(gates[:, 0 * H:1 * H])
            f_g = jax.nn.sigmoid(gates[:, 1 * H:2 * H])
            g_g = jnp.tanh(gates[:, 2 * H:3 * H])
            o_g = jax.nn.sigmoid(gates[:, 3 * H:4 * H])
            c_new = f_g * c_prev + i_g * g_g
            h_new = o_g * jnp.tanh(c_new)
            new_hs.append(h_new)
            new_cs.append(c_new)
            layer_in = h_new                             # input to next layer
        # fused projection slab [mu | d_raw | v] for this time step
        proj_ref[t] = (jnp.dot(layer_in, w_ph, preferred_element_type=jnp.float32)
                       + proj_base)
        return (tuple(new_hs), tuple(new_cs))

    final_hs, final_cs = lax.fori_loop(0, S, step, init, unroll=True)

    # write final LSTM state once (single grid step -> no per-step copies)
    for l in range(L):
        h_out_ref[l] = final_hs[l]
        c_out_ref[l] = final_cs[l]


def make_params(key):
    H, E, L, R, A = HIDDEN_DIM, EMBED_DIM, NUM_LAYERS, RANK_SIZE, NUM_ASSETS
    ks = jax.random.split(key, 9)
    scale = 1.0 / float(np.sqrt(H))

    def unif(k, shape):
        return jax.random.uniform(k, shape, jnp.float32, -scale, scale)

    return dict(
        embed=jax.random.normal(ks[0], (A, E), jnp.float32),          # nn.Embedding
        w_ih0=unif(ks[1], (1, 4 * H)),                                # layer-0 W_ih^T (input=1)
        w_ihu=unif(ks[2], (max(L - 1, 1), H, 4 * H)),                 # layers>=1 W_ih^T
        w_hh=unif(ks[3], (L, H, 4 * H)),                              # W_hh^T per layer
        b_lstm=unif(ks[4], (L, 1, 4 * H)) + unif(ks[5], (L, 1, 4 * H)),  # b_ih + b_hh
        w_ph=unif(ks[6], (H, 2 + R)),     # fused [layer_m | layer_d | layer_v] (LSTM part)
        w_pe=unif(ks[7], (E, 2 + R)),     # fused heads (embedding part)
        b_proj=unif(ks[8], (1, 2 + R)),
    )


def gp_copula_forward(inputs, indices, params):
    """inputs: (S, num_assets) f32, indices: (N,) int32 ->
       mu (S, N, 1), cov (S, N, N), (h_final, c_final) each (L, N, H)."""
    S = inputs.shape[0]
    N = indices.shape[0]
    H, L, R = HIDDEN_DIM, NUM_LAYERS, RANK_SIZE

    x_sel = inputs[:, indices]           # glue: gather sampled-asset columns
    x3 = x_sel[:, :, None]               # (S, N, 1)
    emb = params['embed'][indices]       # glue: embedding gather, (N, E)

    # Host-side weight prep: fused [W_ih^T ; W_hh^T] -> (2H, 4H) per upper layer.
    if L > 1:
        w_cat = jnp.concatenate([params['w_ihu'][:L - 1], params['w_hh'][1:]], axis=1)
    else:
        w_cat = jnp.zeros((1, 2 * H, 4 * H), jnp.float32)     # unused dummy
    w_hh0 = params['w_hh'][0]

    kernel = functools.partial(_gp_copula_kernel, seq_length=S,
                               num_layers=L, hidden_dim=H)

    def full(shape):
        nd = len(shape)
        return pl.BlockSpec(tuple(shape), lambda i, _nd=nd: (0,) * _nd)

    grid_spec = pltpu.PrefetchScalarGridSpec(
        num_scalar_prefetch=0,
        grid=(1,),                         # single step: time loop runs in-kernel
        in_specs=[
            full(x3.shape),                # full (S, N, 1) input block
            full(emb.shape),
            full(params['w_ih0'].shape),
            full(w_hh0.shape),
            full(w_cat.shape),
            full(params['b_lstm'].shape),
            full(params['w_ph'].shape),
            full(params['w_pe'].shape),
            full(params['b_proj'].shape),
        ],
        out_specs=[
            full((S, N, 2 + R)),           # fused [mu | d_raw | v] slab
            full((L, N, H)),               # final h
            full((L, N, H)),               # final c
        ],
    )

    out_shape = (
        jax.ShapeDtypeStruct((S, N, 2 + R), jnp.float32),
        jax.ShapeDtypeStruct((L, N, H), jnp.float32),
        jax.ShapeDtypeStruct((L, N, H), jnp.float32),
    )

    proj, h_fin, c_fin = pl.pallas_call(
        kernel,
        out_shape=out_shape,
        grid_spec=grid_spec,
        compiler_params=pltpu.CompilerParams(dimension_semantics=("arbitrary",)),
    )(x3, emb, params['w_ih0'], w_hh0, w_cat, params['b_lstm'],
      params['w_ph'], params['w_pe'], params['b_proj'])

    # Cheap XLA glue: split heads and assemble cov_t = diag(softplus(d)) + v v^T.
    mu = proj[:, :, 0:1]                                          # (S, N, 1)
    d = _softplus(proj[:, :, 1])                                  # (S, N)
    v = proj[:, :, 2:2 + R]                                       # (S, N, R)
    cov = (jnp.eye(N, dtype=jnp.float32)[None] * d[:, :, None]
           + jnp.einsum('sir,sjr->sij', v, v,
                        precision=lax.Precision.HIGHEST))         # (S, N, N)
    return mu, cov, (h_fin, c_fin)


def reference_forward(inputs, indices, params):
    """Pure-JAX reference mirroring the PyTorch forward (zero initial hidden).
    Uses HIGHEST precision as the accurate ground truth."""
    H, L, R = HIDDEN_DIM, NUM_LAYERS, RANK_SIZE
    x_sel = inputs[:, indices]
    emb = params['embed'][indices]
    N = indices.shape[0]
    h0 = jnp.zeros((L, N, H), jnp.float32)
    c0 = jnp.zeros((L, N, H), jnp.float32)

    def step(carry, x_t):
        h, c = carry
        layer_in = None
        h_list, c_list = [], []
        for l in range(L):
            if l == 0:
                gi = x_t[:, None] * params['w_ih0']
            else:
                gi = jnp.dot(layer_in, params['w_ihu'][l - 1],
                             precision=lax.Precision.HIGHEST)
            gates = (gi
                     + jnp.dot(h[l], params['w_hh'][l], precision=lax.Precision.HIGHEST)
                     + params['b_lstm'][l])
            i_g = jax.nn.sigmoid(gates[:, 0 * H:1 * H])
            f_g = jax.nn.sigmoid(gates[:, 1 * H:2 * H])
            g_g = jnp.tanh(gates[:, 2 * H:3 * H])
            o_g = jax.nn.sigmoid(gates[:, 3 * H:4 * H])
            c_n = f_g * c[l] + i_g * g_g
            h_n = o_g * jnp.tanh(c_n)
            h_list.append(h_n)
            c_list.append(c_n)
            layer_in = h_n
        proj = (jnp.dot(layer_in, params['w_ph'], precision=lax.Precision.HIGHEST)
                + jnp.dot(emb, params['w_pe'], precision=lax.Precision.HIGHEST)
                + params['b_proj'])
        mu = proj[:, 0:1]
        d = _softplus(proj[:, 1])
        v = proj[:, 2:2 + R]
        cov = jnp.diag(d) + jnp.dot(v, v.T, precision=lax.Precision.HIGHEST)
        return (jnp.stack(h_list), jnp.stack(c_list)), (mu, cov)

    _, (mus, covs) = lax.scan(step, (h0, c0), x_sel)
    return mus, covs


if __name__ == "__main__":
    key = jax.random.PRNGKey(0)
    kp, kx = jax.random.split(key)
    params = make_params(kp)

    inputs = jax.random.normal(kx, (SEQ_LENGTH, NUM_ASSETS), jnp.float32)
    indices = jnp.arange(NUM_ASSETS, dtype=jnp.int32)   # as in predict()

    mu, cov, (h_fin, c_fin) = gp_copula_forward(inputs, indices, params)
    jax.block_until_ready((mu, cov, h_fin, c_fin))

    assert mu.shape == (SEQ_LENGTH, NUM_ASSETS, 1)
    assert cov.shape == (SEQ_LENGTH, NUM_ASSETS, NUM_ASSETS)
    assert h_fin.shape == (NUM_LAYERS, NUM_ASSETS, HIDDEN_DIM)
    assert c_fin.shape == (NUM_LAYERS, NUM_ASSETS, HIDDEN_DIM)

    # Kernel matmuls run at DEFAULT precision (single bf16 MXU pass) per the
    # perf review; tolerance widened vs the HIGHEST-precision reference.
    mu_ref, cov_ref = reference_forward(inputs, indices, params)
    np.testing.assert_allclose(np.asarray(mu), np.asarray(mu_ref), rtol=2e-2, atol=2e-2)
    np.testing.assert_allclose(np.asarray(cov), np.asarray(cov_ref), rtol=2e-2, atol=2e-2)

    print("KERNEL_OK")
</pallas_src>

<mosaic_0001>
module attributes {stable_mosaic.version = 11 : i64} {
  func.func @_gp_copula_kernel(%arg0: i32, %arg1: memref<8x4x1xf32, #tpu.memory_space<vmem>>, %arg2: memref<4x8xf32, #tpu.memory_space<vmem>>, %arg3: memref<1x128xf32, #tpu.memory_space<vmem>>, %arg4: memref<32x128xf32, #tpu.memory_space<vmem>>, %arg5: memref<1x64x128xf32, #tpu.memory_space<vmem>>, %arg6: memref<2x1x128xf32, #tpu.memory_space<vmem>>, %arg7: memref<32x6xf32, #tpu.memory_space<vmem>>, %arg8: memref<8x6xf32, #tpu.memory_space<vmem>>, %arg9: memref<1x6xf32, #tpu.memory_space<vmem>>, %arg10: memref<8x4x6xf32, #tpu.memory_space<vmem>>, %arg11: memref<2x4x32xf32, #tpu.memory_space<vmem>>, %arg12: memref<2x4x32xf32, #tpu.memory_space<vmem>>) attributes {dimension_semantics = [#tpu.dimension_semantics<arbitrary>], iteration_bounds = array<i64: 1>, scalar_prefetch = 0 : i64, scratch_operands = 0 : i64, tpu.core_type = #tpu.core_type<tc>, window_params = [{pipeline_mode = #tpu.pipeline_mode<synchronous>, transform_indices = @transform_0, window_bounds = array<i64: 8, 4, 1>}, {pipeline_mode = #tpu.pipeline_mode<synchronous>, transform_indices = @transform_1, window_bounds = array<i64: 4, 8>}, {pipeline_mode = #tpu.pipeline_mode<synchronous>, transform_indices = @transform_2, window_bounds = array<i64: 1, 128>}, {pipeline_mode = #tpu.pipeline_mode<synchronous>, transform_indices = @transform_3, window_bounds = array<i64: 32, 128>}, {pipeline_mode = #tpu.pipeline_mode<synchronous>, transform_indices = @transform_4, window_bounds = array<i64: 1, 64, 128>}, {pipeline_mode = #tpu.pipeline_mode<synchronous>, transform_indices = @transform_5, window_bounds = array<i64: 2, 1, 128>}, {pipeline_mode = #tpu.pipeline_mode<synchronous>, transform_indices = @transform_6, window_bounds = array<i64: 32, 6>}, {pipeline_mode = #tpu.pipeline_mode<synchronous>, transform_indices = @transform_7, window_bounds = array<i64: 8, 6>}, {pipeline_mode = #tpu.pipeline_mode<synchronous>, transform_indices = @transform_8, window_bounds = array<i64: 1, 6>}, {pipeline_mode = #tpu.pipeline_mode<synchronous>, transform_indices = @transform_9, window_bounds = array<i64: 8, 4, 6>}, {pipeline_mode = #tpu.pipeline_mode<synchronous>, transform_indices = @transform_10, window_bounds = array<i64: 2, 4, 32>}, {pipeline_mode = #tpu.pipeline_mode<synchronous>, transform_indices = @transform_11, window_bounds = array<i64: 2, 4, 32>}]} {
    %c0 = arith.constant 0 : index
    %c0_0 = arith.constant 0 : index
    %0 = vector.load %arg3[%c0, %c0_0] : memref<1x128xf32, #tpu.memory_space<vmem>>, vector<1x128xf32>
    %c0_1 = arith.constant 0 : index
    %c0_2 = arith.constant 0 : index
    %1 = vector.load %arg4[%c0_1, %c0_2] : memref<32x128xf32, #tpu.memory_space<vmem>>, vector<32x128xf32>
    %c0_3 = arith.constant 0 : index
    %c0_4 = arith.constant 0 : index
    %c0_5 = arith.constant 0 : index
    %2 = vector.load %arg5[%c0_3, %c0_4, %c0_5] : memref<1x64x128xf32, #tpu.memory_space<vmem>>, vector<1x64x128xf32>
    %3 = vector.shape_cast %2 : vector<1x64x128xf32> to vector<64x128xf32>
    %c0_6 = arith.constant 0 : index
    %c0_7 = arith.constant 0 : index
    %c0_8 = arith.constant 0 : index
    %4 = vector.load %arg6[%c0_6, %c0_7, %c0_8] : memref<2x1x128xf32, #tpu.memory_space<vmem>>, vector<1x1x128xf32>
    %5 = vector.shape_cast %4 : vector<1x1x128xf32> to vector<1x128xf32>
    %c1 = arith.constant 1 : index
    %c0_9 = arith.constant 0 : index
    %c0_10 = arith.constant 0 : index
    %6 = vector.load %arg6[%c1, %c0_9, %c0_10] : memref<2x1x128xf32, #tpu.memory_space<vmem>>, vector<1x1x128xf32>
    %7 = vector.shape_cast %6 : vector<1x1x128xf32> to vector<1x128xf32>
    %c0_11 = arith.constant 0 : index
    %c0_12 = arith.constant 0 : index
    %8 = vector.load %arg7[%c0_11, %c0_12] : memref<32x6xf32, #tpu.memory_space<vmem>>, vector<32x6xf32>
    %c0_13 = arith.constant 0 : index
    %c0_14 = arith.constant 0 : index
    %9 = vector.load %arg2[%c0_13, %c0_14] : memref<4x8xf32, #tpu.memory_space<vmem>>, vector<4x8xf32>
    %c0_15 = arith.constant 0 : index
    %c0_16 = arith.constant 0 : index
    %10 = vector.load %arg8[%c0_15, %c0_16] : memref<8x6xf32, #tpu.memory_space<vmem>>, vector<8x6xf32>
    %cst = arith.constant dense<0.000000e+00> : vector<4x6xf32>
    %11 = tpu.matmul %9, %10, %cst {dimension_numbers = #tpu.dot_dimension_numbers<[1], [0], [0], [1], [0, 0, 1, 1], [], []>} : vector<4x8xf32>, vector<8x6xf32>, vector<4x6xf32> -> vector<4x6xf32>
    %c0_17 = arith.constant 0 : index
    %c0_18 = arith.constant 0 : index
    %12 = vector.load %arg9[%c0_17, %c0_18] : memref<1x6xf32, #tpu.memory_space<vmem>>, vector<1x6xf32>
    %13 = vector.broadcast %12 : vector<1x6xf32> to vector<4x6xf32>
    %14 = arith.addf %11, %13 : vector<4x6xf32>
    %cst_19 = arith.constant 0.000000e+00 : f32
    %15 = vector.broadcast %cst_19 : f32 to vector<4x32xf32>
    %c0_i32 = arith.constant 0 : i32
    %16 = arith.index_cast %c0_i32 : i32 to index
    %c0_20 = arith.constant 0 : index
    %c0_21 = arith.constant 0 : index
    %17 = vector.load %arg1[%16, %c0_20, %c0_21] : memref<8x4x1xf32, #tpu.memory_space<vmem>>, vector<1x4x1xf32>
    %18 = vector.shape_cast %17 : vector<1x4x1xf32> to vector<4x1xf32>
    %19 = vector.broadcast %18 : vector<4x1xf32> to vector<4x128xf32>
    %20 = vector.broadcast %0 : vector<1x128xf32> to vector<4x128xf32>
    %21 = arith.mulf %19, %20 : vector<4x128xf32>
    %cst_22 = arith.constant dense<0.000000e+00> : vector<4x128xf32>
    %22 = tpu.matmul %15, %1, %cst_22 {dimension_numbers = #tpu.dot_dimension_numbers<[1], [0], [0], [1], [0, 0, 1, 1], [], []>} : vector<4x32xf32>, vector<32x128xf32>, vector<4x128xf32> -> vector<4x128xf32>
    %23 = arith.addf %21, %22 : vector<4x128xf32>
    %24 = vector.broadcast %5 : vector<1x128xf32> to vector<4x128xf32>
    %25 = arith.addf %23, %24 : vector<4x128xf32>
    %26 = vector.extract_strided_slice %25 {offsets = [0, 0], sizes = [4, 32], strides = [1, 1]} : vector<4x128xf32> to vector<4x32xf32>
    %27 = arith.negf %26 : vector<4x32xf32>
    %28 = math.exp %27 : vector<4x32xf32>
    %cst_23 = arith.constant 1.000000e+00 : f32
    %29 = vector.broadcast %cst_23 : f32 to vector<4x32xf32>
    %30 = arith.addf %29, %28 : vector<4x32xf32>
    %31 = arith.divf %29, %30 : vector<4x32xf32>
    %32 = vector.extract_strided_slice %25 {offsets = [0, 32], sizes = [4, 32], strides = [1, 1]} : vector<4x128xf32> to vector<4x32xf32>
    %33 = arith.negf %32 : vector<4x32xf32>
    %34 = math.exp %33 : vector<4x32xf32>
    %cst_24 = arith.constant 1.000000e+00 : f32
    %35 = vector.broadcast %cst_24 : f32 to vector<4x32xf32>
    %36 = arith.addf %35, %34 : vector<4x32xf32>
    %37 = arith.divf %35, %36 : vector<4x32xf32>
    %38 = vector.extract_strided_slice %25 {offsets = [0, 64], sizes = [4, 32], strides = [1, 1]} : vector<4x128xf32> to vector<4x32xf32>
    %39 = math.tanh %38 : vector<4x32xf32>
    %40 = vector.extract_strided_slice %25 {offsets = [0, 96], sizes = [4, 32], strides = [1, 1]} : vector<4x128xf32> to vector<4x32xf32>
    %41 = arith.negf %40 : vector<4x32xf32>
    %42 = math.exp %41 : vector<4x32xf32>
    %cst_25 = arith.constant 1.000000e+00 : f32
    %43 = vector.broadcast %cst_25 : f32 to vector<4x32xf32>
    %44 = arith.addf %43, %42 : vector<4x32xf32>
    %45 = arith.divf %43, %44 : vector<4x32xf32>
    %46 = arith.mulf %37, %15 : vector<4x32xf32>
    %47 = arith.mulf %31, %39 : vector<4x32xf32>
    %48 = arith.addf %46, %47 : vector<4x32xf32>
    %49 = math.tanh %48 : vector<4x32xf32>
    %50 = arith.mulf %45, %49 : vector<4x32xf32>
    %51 = tpu.concatenate %50, %15 in 1 : vector<4x32xf32>, vector<4x32xf32> -> vector<4x64xf32>
    %cst_26 = arith.constant dense<0.000000e+00> : vector<4x128xf32>
    %52 = tpu.matmul %51, %3, %cst_26 {dimension_numbers = #tpu.dot_dimension_numbers<[1], [0], [0], [1], [0, 0, 1, 1], [], []>} : vector<4x64xf32>, vector<64x128xf32>, vector<4x128xf32> -> vector<4x128xf32>
    %53 = vector.broadcast %7 : vector<1x128xf32> to vector<4x128xf32>
    %54 = arith.addf %52, %53 : vector<4x128xf32>
    %55 = vector.extract_strided_slice %54 {offsets = [0, 0], sizes = [4, 32], strides = [1, 1]} : vector<4x128xf32> to vector<4x32xf32>
    %56 = arith.negf %55 : vector<4x32xf32>
    %57 = math.exp %56 : vector<4x32xf32>
    %cst_27 = arith.constant 1.000000e+00 : f32
    %58 = vector.broadcast %cst_27 : f32 to vector<4x32xf32>
    %59 = arith.addf %58, %57 : vector<4x32xf32>
    %60 = arith.divf %58, %59 : vector<4x32xf32>
    %61 = vector.extract_strided_slice %54 {offsets = [0, 32], sizes = [4, 32], strides = [1, 1]} : vector<4x128xf32> to vector<4x32xf32>
    %62 = arith.negf %61 : vector<4x32xf32>
    %63 = math.exp %62 : vector<4x32xf32>
    %cst_28 = arith.constant 1.000000e+00 : f32
    %64 = vector.broadcast %cst_28 : f32 to vector<4x32xf32>
    %65 = arith.addf %64, %63 : vector<4x32xf32>
    %66 = arith.divf %64, %65 : vector<4x32xf32>
    %67 = vector.extract_strided_slice %54 {offsets = [0, 64], sizes = [4, 32], strides = [1, 1]} : vector<4x128xf32> to vector<4x32xf32>
    %68 = math.tanh %67 : vector<4x32xf32>
    %69 = vector.extract_strided_slice %54 {offsets = [0, 96], sizes = [4, 32], strides = [1, 1]} : vector<4x128xf32> to vector<4x32xf32>
    %70 = arith.negf %69 : vector<4x32xf32>
    %71 = math.exp %70 : vector<4x32xf32>
    %cst_29 = arith.constant 1.000000e+00 : f32
    %72 = vector.broadcast %cst_29 : f32 to vector<4x32xf32>
    %73 = arith.addf %72, %71 : vector<4x32xf32>
    %74 = arith.divf %72, %73 : vector<4x32xf32>
    %75 = arith.mulf %66, %15 : vector<4x32xf32>
    %76 = arith.mulf %60, %68 : vector<4x32xf32>
    %77 = arith.addf %75, %76 : vector<4x32xf32>
    %78 = math.tanh %77 : vector<4x32xf32>
    %79 = arith.mulf %74, %78 : vector<4x32xf32>
    %cst_30 = arith.constant dense<0.000000e+00> : vector<4x6xf32>
    %80 = tpu.matmul %79, %8, %cst_30 {dimension_numbers = #tpu.dot_dimension_numbers<[1], [0], [0], [1], [0, 0, 1, 1], [], []>} : vector<4x32xf32>, vector<32x6xf32>, vector<4x6xf32> -> vector<4x6xf32>
    %81 = arith.addf %80, %14 : vector<4x6xf32>
    %82 = arith.index_cast %c0_i32 : i32 to index
    %c0_31 = arith.constant 0 : index
    %c0_32 = arith.constant 0 : index
    %83 = vector.load %arg10[%82, %c0_31, %c0_32] : memref<8x4x6xf32, #tpu.memory_space<vmem>>, vector<1x4x6xf32>
    %84 = vector.shape_cast %83 : vector<1x4x6xf32> to vector<4x6xf32>
    %85 = vector.shape_cast %81 : vector<4x6xf32> to vector<1x4x6xf32>
    tpu.vector_store %arg10[%82, %c0_31, %c0_32], %85 {strides = array<i32>} : memref<8x4x6xf32, #tpu.memory_space<vmem>>, vector<1x4x6xf32>,
    %c1_i32 = arith.constant 1 : i32
    %86 = arith.index_cast %c1_i32 : i32 to index
    %c0_33 = arith.constant 0 : index
    %c0_34 = arith.constant 0 : index
    %87 = vector.load %arg1[%86, %c0_33, %c0_34] : memref<8x4x1xf32, #tpu.memory_space<vmem>>, vector<1x4x1xf32>
    %88 = vector.shape_cast %87 : vector<1x4x1xf32> to vector<4x1xf32>
    %89 = vector.broadcast %88 : vector<4x1xf32> to vector<4x128xf32>
    %90 = vector.broadcast %0 : vector<1x128xf32> to vector<4x128xf32>
    %91 = arith.mulf %89, %90 : vector<4x128xf32>
    %cst_35 = arith.constant dense<0.000000e+00> : vector<4x128xf32>
    %92 = tpu.matmul %50, %1, %cst_35 {dimension_numbers = #tpu.dot_dimension_numbers<[1], [0], [0], [1], [0, 0, 1, 1], [], []>} : vector<4x32xf32>, vector<32x128xf32>, vector<4x128xf32> -> vector<4x128xf32>
    %93 = arith.addf %91, %92 : vector<4x128xf32>
    %94 = vector.broadcast %5 : vector<1x128xf32> to vector<4x128xf32>
    %95 = arith.addf %93, %94 : vector<4x128xf32>
    %96 = vector.extract_strided_slice %95 {offsets = [0, 0], sizes = [4, 32], strides = [1, 1]} : vector<4x128xf32> to vector<4x32xf32>
    %97 = arith.negf %96 : vector<4x32xf32>
    %98 = math.exp %97 : vector<4x32xf32>
    %cst_36 = arith.constant 1.000000e+00 : f32
    %99 = vector.broadcast %cst_36 : f32 to vector<4x32xf32>
    %100 = arith.addf %99, %98 : vector<4x32xf32>
    %101 = arith.divf %99, %100 : vector<4x32xf32>
    %102 = vector.extract_strided_slice %95 {offsets = [0, 32], sizes = [4, 32], strides = [1, 1]} : vector<4x128xf32> to vector<4x32xf32>
    %103 = arith.negf %102 : vector<4x32xf32>
    %104 = math.exp %103 : vector<4x32xf32>
    %cst_37 = arith.constant 1.000000e+00 : f32
    %105 = vector.broadcast %cst_37 : f32 to vector<4x32xf32>
    %106 = arith.addf %105, %104 : vector<4x32xf32>
    %107 = arith.divf %105, %106 : vector<4x32xf32>
    %108 = vector.extract_strided_slice %95 {offsets = [0, 64], sizes = [4, 32], strides = [1, 1]} : vector<4x128xf32> to vector<4x32xf32>
    %109 = math.tanh %108 : vector<4x32xf32>
    %110 = vector.extract_strided_slice %95 {offsets = [0, 96], sizes = [4, 32], strides = [1, 1]} : vector<4x128xf32> to vector<4x32xf32>
    %111 = arith.negf %110 : vector<4x32xf32>
    %112 = math.exp %111 : vector<4x32xf32>
    %cst_38 = arith.constant 1.000000e+00 : f32
    %113 = vector.broadcast %cst_38 : f32 to vector<4x32xf32>
    %114 = arith.addf %113, %112 : vector<4x32xf32>
    %115 = arith.divf %113, %114 : vector<4x32xf32>
    %116 = arith.mulf %107, %48 : vector<4x32xf32>
    %117 = arith.mulf %101, %109 : vector<4x32xf32>
    %118 = arith.addf %116, %117 : vector<4x32xf32>
    %119 = math.tanh %118 : vector<4x32xf32>
    %120 = arith.mulf %115, %119 : vector<4x32xf32>
    %121 = tpu.concatenate %120, %79 in 1 : vector<4x32xf32>, vector<4x32xf32> -> vector<4x64xf32>
    %cst_39 = arith.constant dense<0.000000e+00> : vector<4x128xf32>
    %122 = tpu.matmul %121, %3, %cst_39 {dimension_numbers = #tpu.dot_dimension_numbers<[1], [0], [0], [1], [0, 0, 1, 1], [], []>} : vector<4x64xf32>, vector<64x128xf32>, vector<4x128xf32> -> vector<4x128xf32>
    %123 = vector.broadcast %7 : vector<1x128xf32> to vector<4x128xf32>
    %124 = arith.addf %122, %123 : vector<4x128xf32>
    %125 = vector.extract_strided_slice %124 {offsets = [0, 0], sizes = [4, 32], strides = [1, 1]} : vector<4x128xf32> to vector<4x32xf32>
    %126 = arith.negf %125 : vector<4x32xf32>
    %127 = math.exp %126 : vector<4x32xf32>
    %cst_40 = arith.constant 1.000000e+00 : f32
    %128 = vector.broadcast %cst_40 : f32 to vector<4x32xf32>
    %129 = arith.addf %128, %127 : vector<4x32xf32>
    %130 = arith.divf %128, %129 : vector<4x32xf32>
    %131 = vector.extract_strided_slice %124 {offsets = [0, 32], sizes = [4, 32], strides = [1, 1]} : vector<4x128xf32> to vector<4x32xf32>
    %132 = arith.negf %131 : vector<4x32xf32>
    %133 = math.exp %132 : vector<4x32xf32>
    %cst_41 = arith.constant 1.000000e+00 : f32
    %134 = vector.broadcast %cst_41 : f32 to vector<4x32xf32>
    %135 = arith.addf %134, %133 : vector<4x32xf32>
    %136 = arith.divf %134, %135 : vector<4x32xf32>
    %137 = vector.extract_strided_slice %124 {offsets = [0, 64], sizes = [4, 32], strides = [1, 1]} : vector<4x128xf32> to vector<4x32xf32>
    %138 = math.tanh %137 : vector<4x32xf32>
    %139 = vector.extract_strided_slice %124 {offsets = [0, 96], sizes = [4, 32], strides = [1, 1]} : vector<4x128xf32> to vector<4x32xf32>
    %140 = arith.negf %139 : vector<4x32xf32>
    %141 = math.exp %140 : vector<4x32xf32>
    %cst_42 = arith.constant 1.000000e+00 : f32
    %142 = vector.broadcast %cst_42 : f32 to vector<4x32xf32>
    %143 = arith.addf %142, %141 : vector<4x32xf32>
    %144 = arith.divf %142, %143 : vector<4x32xf32>
    %145 = arith.mulf %136, %77 : vector<4x32xf32>
    %146 = arith.mulf %130, %138 : vector<4x32xf32>
    %147 = arith.addf %145, %146 : vector<4x32xf32>
    %148 = math.tanh %147 : vector<4x32xf32>
    %149 = arith.mulf %144, %148 : vector<4x32xf32>
    %cst_43 = arith.constant dense<0.000000e+00> : vector<4x6xf32>
    %150 = tpu.matmul %149, %8, %cst_43 {dimension_numbers = #tpu.dot_dimension_numbers<[1], [0], [0], [1], [0, 0, 1, 1], [], []>} : vector<4x32xf32>, vector<32x6xf32>, vector<4x6xf32> -> vector<4x6xf32>
    %151 = arith.addf %150, %14 : vector<4x6xf32>
    %152 = arith.index_cast %c1_i32 : i32 to index
    %c0_44 = arith.constant 0 : index
    %c0_45 = arith.constant 0 : index
    %153 = vector.load %arg10[%152, %c0_44, %c0_45] : memref<8x4x6xf32, #tpu.memory_space<vmem>>, vector<1x4x6xf32>
    %154 = vector.shape_cast %153 : vector<1x4x6xf32> to vector<4x6xf32>
    %155 = vector.shape_cast %151 : vector<4x6xf32> to vector<1x4x6xf32>
    tpu.vector_store %arg10[%152, %c0_44, %c0_45], %155 {strides = array<i32>} : memref<8x4x6xf32, #tpu.memory_space<vmem>>, vector<1x4x6xf32>,
    %c2_i32 = arith.constant 2 : i32
    %156 = arith.index_cast %c2_i32 : i32 to index
    %c0_46 = arith.constant 0 : index
    %c0_47 = arith.constant 0 : index
    %157 = vector.load %arg1[%156, %c0_46, %c0_47] : memref<8x4x1xf32, #tpu.memory_space<vmem>>, vector<1x4x1xf32>
    %158 = vector.shape_cast %157 : vector<1x4x1xf32> to vector<4x1xf32>
    %159 = vector.broadcast %158 : vector<4x1xf32> to vector<4x128xf32>
    %160 = vector.broadcast %0 : vector<1x128xf32> to vector<4x128xf32>
    %161 = arith.mulf %159, %160 : vector<4x128xf32>
    %cst_48 = arith.constant dense<0.000000e+00> : vector<4x128xf32>
    %162 = tpu.matmul %120, %1, %cst_48 {dimension_numbers = #tpu.dot_dimension_numbers<[1], [0], [0], [1], [0, 0, 1, 1], [], []>} : vector<4x32xf32>, vector<32x128xf32>, vector<4x128xf32> -> vector<4x128xf32>
    %163 = arith.addf %161, %162 : vector<4x128xf32>
    %164 = vector.broadcast %5 : vector<1x128xf32> to vector<4x128xf32>
    %165 = arith.addf %163, %164 : vector<4x128xf32>
    %166 = vector.extract_strided_slice %165 {offsets = [0, 0], sizes = [4, 32], strides = [1, 1]} : vector<4x128xf32> to vector<4x32xf32>
    %167 = arith.negf %166 : vector<4x32xf32>
    %168 = math.exp %167 : vector<4x32xf32>
    %cst_49 = arith.constant 1.000000e+00 : f32
    %169 = vector.broadcast %cst_49 : f32 to vector<4x32xf32>
    %170 = arith.addf %169, %168 : vector<4x32xf32>
    %171 = arith.divf %169, %170 : vector<4x32xf32>
    %172 = vector.extract_strided_slice %165 {offsets = [0, 32], sizes = [4, 32], strides = [1, 1]} : vector<4x128xf32> to vector<4x32xf32>
    %173 = arith.negf %172 : vector<4x32xf32>
    %174 = math.exp %173 : vector<4x32xf32>
    %cst_50 = arith.constant 1.000000e+00 : f32
    %175 = vector.broadcast %cst_50 : f32 to vector<4x32xf32>
    %176 = arith.addf %175, %174 : vector<4x32xf32>
    %177 = arith.divf %175, %176 : vector<4x32xf32>
    %178 = vector.extract_strided_slice %165 {offsets = [0, 64], sizes = [4, 32], strides = [1, 1]} : vector<4x128xf32> to vector<4x32xf32>
    %179 = math.tanh %178 : vector<4x32xf32>
    %180 = vector.extract_strided_slice %165 {offsets = [0, 96], sizes = [4, 32], strides = [1, 1]} : vector<4x128xf32> to vector<4x32xf32>
    %181 = arith.negf %180 : vector<4x32xf32>
    %182 = math.exp %181 : vector<4x32xf32>
    %cst_51 = arith.constant 1.000000e+00 : f32
    %183 = vector.broadcast %cst_51 : f32 to vector<4x32xf32>
    %184 = arith.addf %183, %182 : vector<4x32xf32>
    %185 = arith.divf %183, %184 : vector<4x32xf32>
    %186 = arith.mulf %177, %118 : vector<4x32xf32>
    %187 = arith.mulf %171, %179 : vector<4x32xf32>
    %188 = arith.addf %186, %187 : vector<4x32xf32>
    %189 = math.tanh %188 : vector<4x32xf32>
    %190 = arith.mulf %185, %189 : vector<4x32xf32>
    %191 = tpu.concatenate %190, %149 in 1 : vector<4x32xf32>, vector<4x32xf32> -> vector<4x64xf32>
    %cst_52 = arith.constant dense<0.000000e+00> : vector<4x128xf32>
    %192 = tpu.matmul %191, %3, %cst_52 {dimension_numbers = #tpu.dot_dimension_numbers<[1], [0], [0], [1], [0, 0, 1, 1], [], []>} : vector<4x64xf32>, vector<64x128xf32>, vector<4x128xf32> -> vector<4x128xf32>
    %193 = vector.broadcast %7 : vector<1x128xf32> to vector<4x128xf32>
    %194 = arith.addf %192, %193 : vector<4x128xf32>
    %195 = vector.extract_strided_slice %194 {offsets = [0, 0], sizes = [4, 32], strides = [1, 1]} : vector<4x128xf32> to vector<4x32xf32>
    %196 = arith.negf %195 : vector<4x32xf32>
    %197 = math.exp %196 : vector<4x32xf32>
    %cst_53 = arith.constant 1.000000e+00 : f32
    %198 = vector.broadcast %cst_53 : f32 to vector<4x32xf32>
    %199 = arith.addf %198, %197 : vector<4x32xf32>
    %200 = arith.divf %198, %199 : vector<4x32xf32>
    %201 = vector.extract_strided_slice %194 {offsets = [0, 32], sizes = [4, 32], strides = [1, 1]} : vector<4x128xf32> to vector<4x32xf32>
    %202 = arith.negf %201 : vector<4x32xf32>
    %203 = math.exp %202 : vector<4x32xf32>
    %cst_54 = arith.constant 1.000000e+00 : f32
    %204 = vector.broadcast %cst_54 : f32 to vector<4x32xf32>
    %205 = arith.addf %204, %203 : vector<4x32xf32>
    %206 = arith.divf %204, %205 : vector<4x32xf32>
    %207 = vector.extract_strided_slice %194 {offsets = [0, 64], sizes = [4, 32], strides = [1, 1]} : vector<4x128xf32> to vector<4x32xf32>
    %208 = math.tanh %207 : vector<4x32xf32>
    %209 = vector.extract_strided_slice %194 {offsets = [0, 96], sizes = [4, 32], strides = [1, 1]} : vector<4x128xf32> to vector<4x32xf32>
    %210 = arith.negf %209 : vector<4x32xf32>
    %211 = math.exp %210 : vector<4x32xf32>
    %cst_55 = arith.constant 1.000000e+00 : f32
    %212 = vector.broadcast %cst_55 : f32 to vector<4x32xf32>
    %213 = arith.addf %212, %211 : vector<4x32xf32>
    %214 = arith.divf %212, %213 : vector<4x32xf32>
    %215 = arith.mulf %206, %147 : vector<4x32xf32>
    %216 = arith.mulf %200, %208 : vector<4x32xf32>
    %217 = arith.addf %215, %216 : vector<4x32xf32>
    %218 = math.tanh %217 : vector<4x32xf32>
    %219 = arith.mulf %214, %218 : vector<4x32xf32>
    %cst_56 = arith.constant dense<0.000000e+00> : vector<4x6xf32>
    %220 = tpu.matmul %219, %8, %cst_56 {dimension_numbers = #tpu.dot_dimension_numbers<[1], [0], [0], [1], [0, 0, 1, 1], [], []>} : vector<4x32xf32>, vector<32x6xf32>, vector<4x6xf32> -> vector<4x6xf32>
    %221 = arith.addf %220, %14 : vector<4x6xf32>
    %222 = arith.index_cast %c2_i32 : i32 to index
    %c0_57 = arith.constant 0 : index
    %c0_58 = arith.constant 0 : index
    %223 = vector.load %arg10[%222, %c0_57, %c0_58] : memref<8x4x6xf32, #tpu.memory_space<vmem>>, vector<1x4x6xf32>
    %224 = vector.shape_cast %223 : vector<1x4x6xf32> to vector<4x6xf32>
    %225 = vector.shape_cast %221 : vector<4x6xf32> to vector<1x4x6xf32>
    tpu.vector_store %arg10[%222, %c0_57, %c0_58], %225 {strides = array<i32>} : memref<8x4x6xf32, #tpu.memory_space<vmem>>, vector<1x4x6xf32>,
    %c3_i32 = arith.constant 3 : i32
    %226 = arith.index_cast %c3_i32 : i32 to index
    %c0_59 = arith.constant 0 : index
    %c0_60 = arith.constant 0 : index
    %227 = vector.load %arg1[%226, %c0_59, %c0_60] : memref<8x4x1xf32, #tpu.memory_space<vmem>>, vector<1x4x1xf32>
    %228 = vector.shape_cast %227 : vector<1x4x1xf32> to vector<4x1xf32>
    %229 = vector.broadcast %228 : vector<4x1xf32> to vector<4x128xf32>
    %230 = vector.broadcast %0 : vector<1x128xf32> to vector<4x128xf32>
    %231 = arith.mulf %229, %230 : vector<4x128xf32>
    %cst_61 = arith.constant dense<0.000000e+00> : vector<4x128xf32>
    %232 = tpu.matmul %190, %1, %cst_61 {dimension_numbers = #tpu.dot_dimension_numbers<[1], [0], [0], [1], [0, 0, 1, 1], [], []>} : vector<4x32xf32>, vector<32x128xf32>, vector<4x128xf32> -> vector<4x128xf32>
    %233 = arith.addf %231, %232 : vector<4x128xf32>
    %234 = vector.broadcast %5 : vector<1x128xf32> to vector<4x128xf32>
    %235 = arith.addf %233, %234 : vector<4x128xf32>
    %236 = vector.extract_strided_slice %235 {offsets = [0, 0], sizes = [4, 32], strides = [1, 1]} : vector<4x128xf32> to vector<4x32xf32>
    %237 = arith.negf %236 : vector<4x32xf32>
    %238 = math.exp %237 : vector<4x32xf32>
    %cst_62 = arith.constant 1.000000e+00 : f32
    %239 = vector.broadcast %cst_62 : f32 to vector<4x32xf32>
    %240 = arith.addf %239, %238 : vector<4x32xf32>
    %241 = arith.divf %239, %240 : vector<4x32xf32>
    %242 = vector.extract_strided_slice %235 {offsets = [0, 32], sizes = [4, 32], strides = [1, 1]} : vector<4x128xf32> to vector<4x32xf32>
    %243 = arith.negf %242 : vector<4x32xf32>
    %244 = math.exp %243 : vector<4x32xf32>
    %cst_63 = arith.constant 1.000000e+00 : f32
    %245 = vector.broadcast %cst_63 : f32 to vector<4x32xf32>
    %246 = arith.addf %245, %244 : vector<4x32xf32>
    %247 = arith.divf %245, %246 : vector<4x32xf32>
    %248 = vector.extract_strided_slice %235 {offsets = [0, 64], sizes = [4, 32], strides = [1, 1]} : vector<4x128xf32> to vector<4x32xf32>
    %249 = math.tanh %248 : vector<4x32xf32>
    %250 = vector.extract_strided_slice %235 {offsets = [0, 96], sizes = [4, 32], strides = [1, 1]} : vector<4x128xf32> to vector<4x32xf32>
    %251 = arith.negf %250 : vector<4x32xf32>
    %252 = math.exp %251 : vector<4x32xf32>
    %cst_64 = arith.constant 1.000000e+00 : f32
    %253 = vector.broadcast %cst_64 : f32 to vector<4x32xf32>
    %254 = arith.addf %253, %252 : vector<4x32xf32>
    %255 = arith.divf %253, %254 : vector<4x32xf32>
    %256 = arith.mulf %247, %188 : vector<4x32xf32>
    %257 = arith.mulf %241, %249 : vector<4x32xf32>
    %258 = arith.addf %256, %257 : vector<4x32xf32>
    %259 = math.tanh %258 : vector<4x32xf32>
    %260 = arith.mulf %255, %259 : vector<4x32xf32>
    %261 = tpu.concatenate %260, %219 in 1 : vector<4x32xf32>, vector<4x32xf32> -> vector<4x64xf32>
    %cst_65 = arith.constant dense<0.000000e+00> : vector<4x128xf32>
    %262 = tpu.matmul %261, %3, %cst_65 {dimension_numbers = #tpu.dot_dimension_numbers<[1], [0], [0], [1], [0, 0, 1, 1], [], []>} : vector<4x64xf32>, vector<64x128xf32>, vector<4x128xf32> -> vector<4x128xf32>
    %263 = vector.broadcast %7 : vector<1x128xf32> to vector<4x128xf32>
    %264 = arith.addf %262, %263 : vector<4x128xf32>
    %265 = vector.extract_strided_slice %264 {offsets = [0, 0], sizes = [4, 32], strides = [1, 1]} : vector<4x128xf32> to vector<4x32xf32>
    %266 = arith.negf %265 : vector<4x32xf32>
    %267 = math.exp %266 : vector<4x32xf32>
    %cst_66 = arith.constant 1.000000e+00 : f32
    %268 = vector.broadcast %cst_66 : f32 to vector<4x32xf32>
    %269 = arith.addf %268, %267 : vector<4x32xf32>
    %270 = arith.divf %268, %269 : vector<4x32xf32>
    %271 = vector.extract_strided_slice %264 {offsets = [0, 32], sizes = [4, 32], strides = [1, 1]} : vector<4x128xf32> to vector<4x32xf32>
    %272 = arith.negf %271 : vector<4x32xf32>
    %273 = math.exp %272 : vector<4x32xf32>
    %cst_67 = arith.constant 1.000000e+00 : f32
    %274 = vector.broadcast %cst_67 : f32 to vector<4x32xf32>
    %275 = arith.addf %274, %273 : vector<4x32xf32>
    %276 = arith.divf %274, %275 : vector<4x32xf32>
    %277 = vector.extract_strided_slice %264 {offsets = [0, 64], sizes = [4, 32], strides = [1, 1]} : vector<4x128xf32> to vector<4x32xf32>
    %278 = math.tanh %277 : vector<4x32xf32>
    %279 = vector.extract_strided_slice %264 {offsets = [0, 96], sizes = [4, 32], strides = [1, 1]} : vector<4x128xf32> to vector<4x32xf32>
    %280 = arith.negf %279 : vector<4x32xf32>
    %281 = math.exp %280 : vector<4x32xf32>
    %cst_68 = arith.constant 1.000000e+00 : f32
    %282 = vector.broadcast %cst_68 : f32 to vector<4x32xf32>
    %283 = arith.addf %282, %281 : vector<4x32xf32>
    %284 = arith.divf %282, %283 : vector<4x32xf32>
    %285 = arith.mulf %276, %217 : vector<4x32xf32>
    %286 = arith.mulf %270, %278 : vector<4x32xf32>
    %287 = arith.addf %285, %286 : vector<4x32xf32>
    %288 = math.tanh %287 : vector<4x32xf32>
    %289 = arith.mulf %284, %288 : vector<4x32xf32>
    %cst_69 = arith.constant dense<0.000000e+00> : vector<4x6xf32>
    %290 = tpu.matmul %289, %8, %cst_69 {dimension_numbers = #tpu.dot_dimension_numbers<[1], [0], [0], [1], [0, 0, 1, 1], [], []>} : vector<4x32xf32>, vector<32x6xf32>, vector<4x6xf32> -> vector<4x6xf32>
    %291 = arith.addf %290, %14 : vector<4x6xf32>
    %292 = arith.index_cast %c3_i32 : i32 to index
    %c0_70 = arith.constant 0 : index
    %c0_71 = arith.constant 0 : index
    %293 = vector.load %arg10[%292, %c0_70, %c0_71] : memref<8x4x6xf32, #tpu.memory_space<vmem>>, vector<1x4x6xf32>
    %294 = vector.shape_cast %293 : vector<1x4x6xf32> to vector<4x6xf32>
    %295 = vector.shape_cast %291 : vector<4x6xf32> to vector<1x4x6xf32>
    tpu.vector_store %arg10[%292, %c0_70, %c0_71], %295 {strides = array<i32>} : memref<8x4x6xf32, #tpu.memory_space<vmem>>, vector<1x4x6xf32>,
    %c4_i32 = arith.constant 4 : i32
    %296 = arith.index_cast %c4_i32 : i32 to index
    %c0_72 = arith.constant 0 : index
    %c0_73 = arith.constant 0 : index
    %297 = vector.load %arg1[%296, %c0_72, %c0_73] : memref<8x4x1xf32, #tpu.memory_space<vmem>>, vector<1x4x1xf32>
    %298 = vector.shape_cast %297 : vector<1x4x1xf32> to vector<4x1xf32>
    %299 = vector.broadcast %298 : vector<4x1xf32> to vector<4x128xf32>
    %300 = vector.broadcast %0 : vector<1x128xf32> to vector<4x128xf32>
    %301 = arith.mulf %299, %300 : vector<4x128xf32>
    %cst_74 = arith.constant dense<0.000000e+00> : vector<4x128xf32>
    %302 = tpu.matmul %260, %1, %cst_74 {dimension_numbers = #tpu.dot_dimension_numbers<[1], [0], [0], [1], [0, 0, 1, 1], [], []>} : vector<4x32xf32>, vector<32x128xf32>, vector<4x128xf32> -> vector<4x128xf32>
    %303 = arith.addf %301, %302 : vector<4x128xf32>
    %304 = vector.broadcast %5 : vector<1x128xf32> to vector<4x128xf32>
    %305 = arith.addf %303, %304 : vector<4x128xf32>
    %306 = vector.extract_strided_slice %305 {offsets = [0, 0], sizes = [4, 32], strides = [1, 1]} : vector<4x128xf32> to vector<4x32xf32>
    %307 = arith.negf %306 : vector<4x32xf32>
    %308 = math.exp %307 : vector<4x32xf32>
    %cst_75 = arith.constant 1.000000e+00 : f32
    %309 = vector.broadcast %cst_75 : f32 to vector<4x32xf32>
    %310 = arith.addf %309, %308 : vector<4x32xf32>
    %311 = arith.divf %309, %310 : vector<4x32xf32>
    %312 = vector.extract_strided_slice %305 {offsets = [0, 32], sizes = [4, 32], strides = [1, 1]} : vector<4x128xf32> to vector<4x32xf32>
    %313 = arith.negf %312 : vector<4x32xf32>
    %314 = math.exp %313 : vector<4x32xf32>
    %cst_76 = arith.constant 1.000000e+00 : f32
    %315 = vector.broadcast %cst_76 : f32 to vector<4x32xf32>
    %316 = arith.addf %315, %314 : vector<4x32xf32>
    %317 = arith.divf %315, %316 : vector<4x32xf32>
    %318 = vector.extract_strided_slice %305 {offsets = [0, 64], sizes = [4, 32], strides = [1, 1]} : vector<4x128xf32> to vector<4x32xf32>
    %319 = math.tanh %318 : vector<4x32xf32>
    %320 = vector.extract_strided_slice %305 {offsets = [0, 96], sizes = [4, 32], strides = [1, 1]} : vector<4x128xf32> to vector<4x32xf32>
    %321 = arith.negf %320 : vector<4x32xf32>
    %322 = math.exp %321 : vector<4x32xf32>
    %cst_77 = arith.constant 1.000000e+00 : f32
    %323 = vector.broadcast %cst_77 : f32 to vector<4x32xf32>
    %324 = arith.addf %323, %322 : vector<4x32xf32>
    %325 = arith.divf %323, %324 : vector<4x32xf32>
    %326 = arith.mulf %317, %258 : vector<4x32xf32>
    %327 = arith.mulf %311, %319 : vector<4x32xf32>
    %328 = arith.addf %326, %327 : vector<4x32xf32>
    %329 = math.tanh %328 : vector<4x32xf32>
    %330 = arith.mulf %325, %329 : vector<4x32xf32>
    %331 = tpu.concatenate %330, %289 in 1 : vector<4x32xf32>, vector<4x32xf32> -> vector<4x64xf32>
    %cst_78 = arith.constant dense<0.000000e+00> : vector<4x128xf32>
    %332 = tpu.matmul %331, %3, %cst_78 {dimension_numbers = #tpu.dot_dimension_numbers<[1], [0], [0], [1], [0, 0, 1, 1], [], []>} : vector<4x64xf32>, vector<64x128xf32>, vector<4x128xf32> -> vector<4x128xf32>
    %333 = vector.broadcast %7 : vector<1x128xf32> to vector<4x128xf32>
    %334 = arith.addf %332, %333 : vector<4x128xf32>
    %335 = vector.extract_strided_slice %334 {offsets = [0, 0], sizes = [4, 32], strides = [1, 1]} : vector<4x128xf32> to vector<4x32xf32>
    %336 = arith.negf %335 : vector<4x32xf32>
    %337 = math.exp %336 : vector<4x32xf32>
    %cst_79 = arith.constant 1.000000e+00 : f32
    %338 = vector.broadcast %cst_79 : f32 to vector<4x32xf32>
    %339 = arith.addf %338, %337 : vector<4x32xf32>
    %340 = arith.divf %338, %339 : vector<4x32xf32>
    %341 = vector.extract_strided_slice %334 {offsets = [0, 32], sizes = [4, 32], strides = [1, 1]} : vector<4x128xf32> to vector<4x32xf32>
    %342 = arith.negf %341 : vector<4x32xf32>
    %343 = math.exp %342 : vector<4x32xf32>
    %cst_80 = arith.constant 1.000000e+00 : f32
    %344 = vector.broadcast %cst_80 : f32 to vector<4x32xf32>
    %345 = arith.addf %344, %343 : vector<4x32xf32>
    %346 = arith.divf %344, %345 : vector<4x32xf32>
    %347 = vector.extract_strided_slice %334 {offsets = [0, 64], sizes = [4, 32], strides = [1, 1]} : vector<4x128xf32> to vector<4x32xf32>
    %348 = math.tanh %347 : vector<4x32xf32>
    %349 = vector.extract_strided_slice %334 {offsets = [0, 96], sizes = [4, 32], strides = [1, 1]} : vector<4x128xf32> to vector<4x32xf32>
    %350 = arith.negf %349 : vector<4x32xf32>
    %351 = math.exp %350 : vector<4x32xf32>
    %cst_81 = arith.constant 1.000000e+00 : f32
    %352 = vector.broadcast %cst_81 : f32 to vector<4x32xf32>
    %353 = arith.addf %352, %351 : vector<4x32xf32>
    %354 = arith.divf %352, %353 : vector<4x32xf32>
    %355 = arith.mulf %346, %287 : vector<4x32xf32>
    %356 = arith.mulf %340, %348 : vector<4x32xf32>
    %357 = arith.addf %355, %356 : vector<4x32xf32>
    %358 = math.tanh %357 : vector<4x32xf32>
    %359 = arith.mulf %354, %358 : vector<4x32xf32>
    %cst_82 = arith.constant dense<0.000000e+00> : vector<4x6xf32>
    %360 = tpu.matmul %359, %8, %cst_82 {dimension_numbers = #tpu.dot_dimension_numbers<[1], [0], [0], [1], [0, 0, 1, 1], [], []>} : vector<4x32xf32>, vector<32x6xf32>, vector<4x6xf32> -> vector<4x6xf32>
    %361 = arith.addf %360, %14 : vector<4x6xf32>
    %362 = arith.index_cast %c4_i32 : i32 to index
    %c0_83 = arith.constant 0 : index
    %c0_84 = arith.constant 0 : index
    %363 = vector.load %arg10[%362, %c0_83, %c0_84] : memref<8x4x6xf32, #tpu.memory_space<vmem>>, vector<1x4x6xf32>
    %364 = vector.shape_cast %363 : vector<1x4x6xf32> to vector<4x6xf32>
    %365 = vector.shape_cast %361 : vector<4x6xf32> to vector<1x4x6xf32>
    tpu.vector_store %arg10[%362, %c0_83, %c0_84], %365 {strides = array<i32>} : memref<8x4x6xf32, #tpu.memory_space<vmem>>, vector<1x4x6xf32>,
    %c5_i32 = arith.constant 5 : i32
    %366 = arith.index_cast %c5_i32 : i32 to index
    %c0_85 = arith.constant 0 : index
    %c0_86 = arith.constant 0 : index
    %367 = vector.load %arg1[%366, %c0_85, %c0_86] : memref<8x4x1xf32, #tpu.memory_space<vmem>>, vector<1x4x1xf32>
    %368 = vector.shape_cast %367 : vector<1x4x1xf32> to vector<4x1xf32>
    %369 = vector.broadcast %368 : vector<4x1xf32> to vector<4x128xf32>
    %370 = vector.broadcast %0 : vector<1x128xf32> to vector<4x128xf32>
    %371 = arith.mulf %369, %370 : vector<4x128xf32>
    %cst_87 = arith.constant dense<0.000000e+00> : vector<4x128xf32>
    %372 = tpu.matmul %330, %1, %cst_87 {dimension_numbers = #tpu.dot_dimension_numbers<[1], [0], [0], [1], [0, 0, 1, 1], [], []>} : vector<4x32xf32>, vector<32x128xf32>, vector<4x128xf32> -> vector<4x128xf32>
    %373 = arith.addf %371, %372 : vector<4x128xf32>
    %374 = vector.broadcast %5 : vector<1x128xf32> to vector<4x128xf32>
    %375 = arith.addf %373, %374 : vector<4x128xf32>
    %376 = vector.extract_strided_slice %375 {offsets = [0, 0], sizes = [4, 32], strides = [1, 1]} : vector<4x128xf32> to vector<4x32xf32>
    %377 = arith.negf %376 : vector<4x32xf32>
    %378 = math.exp %377 : vector<4x32xf32>
    %cst_88 = arith.constant 1.000000e+00 : f32
    %379 = vector.broadcast %cst_88 : f32 to vector<4x32xf32>
    %380 = arith.addf %379, %378 : vector<4x32xf32>
    %381 = arith.divf %379, %380 : vector<4x32xf32>
    %382 = vector.extract_strided_slice %375 {offsets = [0, 32], sizes = [4, 32], strides = [1, 1]} : vector<4x128xf32> to vector<4x32xf32>
    %383 = arith.negf %382 : vector<4x32xf32>
    %384 = math.exp %383 : vector<4x32xf32>
    %cst_89 = arith.constant 1.000000e+00 : f32
    %385 = vector.broadcast %cst_89 : f32 to vector<4x32xf32>
    %386 = arith.addf %385, %384 : vector<4x32xf32>
    %387 = arith.divf %385, %386 : vector<4x32xf32>
    %388 = vector.extract_strided_slice %375 {offsets = [0, 64], sizes = [4, 32], strides = [1, 1]} : vector<4x128xf32> to vector<4x32xf32>
    %389 = math.tanh %388 : vector<4x32xf32>
    %390 = vector.extract_strided_slice %375 {offsets = [0, 96], sizes = [4, 32], strides = [1, 1]} : vector<4x128xf32> to vector<4x32xf32>
    %391 = arith.negf %390 : vector<4x32xf32>
    %392 = math.exp %391 : vector<4x32xf32>
    %cst_90 = arith.constant 1.000000e+00 : f32
    %393 = vector.broadcast %cst_90 : f32 to vector<4x32xf32>
    %394 = arith.addf %393, %392 : vector<4x32xf32>
    %395 = arith.divf %393, %394 : vector<4x32xf32>
    %396 = arith.mulf %387, %328 : vector<4x32xf32>
    %397 = arith.mulf %381, %389 : vector<4x32xf32>
    %398 = arith.addf %396, %397 : vector<4x32xf32>
    %399 = math.tanh %398 : vector<4x32xf32>
    %400 = arith.mulf %395, %399 : vector<4x32xf32>
    %401 = tpu.concatenate %400, %359 in 1 : vector<4x32xf32>, vector<4x32xf32> -> vector<4x64xf32>
    %cst_91 = arith.constant dense<0.000000e+00> : vector<4x128xf32>
    %402 = tpu.matmul %401, %3, %cst_91 {dimension_numbers = #tpu.dot_dimension_numbers<[1], [0], [0], [1], [0, 0, 1, 1], [], []>} : vector<4x64xf32>, vector<64x128xf32>, vector<4x128xf32> -> vector<4x128xf32>
    %403 = vector.broadcast %7 : vector<1x128xf32> to vector<4x128xf32>
    %404 = arith.addf %402, %403 : vector<4x128xf32>
    %405 = vector.extract_strided_slice %404 {offsets = [0, 0], sizes = [4, 32], strides = [1, 1]} : vector<4x128xf32> to vector<4x32xf32>
    %406 = arith.negf %405 : vector<4x32xf32>
    %407 = math.exp %406 : vector<4x32xf32>
    %cst_92 = arith.constant 1.000000e+00 : f32
    %408 = vector.broadcast %cst_92 : f32 to vector<4x32xf32>
    %409 = arith.addf %408, %407 : vector<4x32xf32>
    %410 = arith.divf %408, %409 : vector<4x32xf32>
    %411 = vector.extract_strided_slice %404 {offsets = [0, 32], sizes = [4, 32], strides = [1, 1]} : vector<4x128xf32> to vector<4x32xf32>
    %412 = arith.negf %411 : vector<4x32xf32>
    %413 = math.exp %412 : vector<4x32xf32>
    %cst_93 = arith.constant 1.000000e+00 : f32
    %414 = vector.broadcast %cst_93 : f32 to vector<4x32xf32>
    %415 = arith.addf %414, %413 : vector<4x32xf32>
    %416 = arith.divf %414, %415 : vector<4x32xf32>
    %417 = vector.extract_strided_slice %404 {offsets = [0, 64], sizes = [4, 32], strides = [1, 1]} : vector<4x128xf32> to vector<4x32xf32>
    %418 = math.tanh %417 : vector<4x32xf32>
    %419 = vector.extract_strided_slice %404 {offsets = [0, 96], sizes = [4, 32], strides = [1, 1]} : vector<4x128xf32> to vector<4x32xf32>
    %420 = arith.negf %419 : vector<4x32xf32>
    %421 = math.exp %420 : vector<4x32xf32>
    %cst_94 = arith.constant 1.000000e+00 : f32
    %422 = vector.broadcast %cst_94 : f32 to vector<4x32xf32>
    %423 = arith.addf %422, %421 : vector<4x32xf32>
    %424 = arith.divf %422, %423 : vector<4x32xf32>
    %425 = arith.mulf %416, %357 : vector<4x32xf32>
    %426 = arith.mulf %410, %418 : vector<4x32xf32>
    %427 = arith.addf %425, %426 : vector<4x32xf32>
    %428 = math.tanh %427 : vector<4x32xf32>
    %429 = arith.mulf %424, %428 : vector<4x32xf32>
    %cst_95 = arith.constant dense<0.000000e+00> : vector<4x6xf32>
    %430 = tpu.matmul %429, %8, %cst_95 {dimension_numbers = #tpu.dot_dimension_numbers<[1], [0], [0], [1], [0, 0, 1, 1], [], []>} : vector<4x32xf32>, vector<32x6xf32>, vector<4x6xf32> -> vector<4x6xf32>
    %431 = arith.addf %430, %14 : vector<4x6xf32>
    %432 = arith.index_cast %c5_i32 : i32 to index
    %c0_96 = arith.constant 0 : index
    %c0_97 = arith.constant 0 : index
    %433 = vector.load %arg10[%432, %c0_96, %c0_97] : memref<8x4x6xf32, #tpu.memory_space<vmem>>, vector<1x4x6xf32>
    %434 = vector.shape_cast %433 : vector<1x4x6xf32> to vector<4x6xf32>
    %435 = vector.shape_cast %431 : vector<4x6xf32> to vector<1x4x6xf32>
    tpu.vector_store %arg10[%432, %c0_96, %c0_97], %435 {strides = array<i32>} : memref<8x4x6xf32, #tpu.memory_space<vmem>>, vector<1x4x6xf32>,
    %c6_i32 = arith.constant 6 : i32
    %436 = arith.index_cast %c6_i32 : i32 to index
    %c0_98 = arith.constant 0 : index
    %c0_99 = arith.constant 0 : index
    %437 = vector.load %arg1[%436, %c0_98, %c0_99] : memref<8x4x1xf32, #tpu.memory_space<vmem>>, vector<1x4x1xf32>
    %438 = vector.shape_cast %437 : vector<1x4x1xf32> to vector<4x1xf32>
    %439 = vector.broadcast %438 : vector<4x1xf32> to vector<4x128xf32>
    %440 = vector.broadcast %0 : vector<1x128xf32> to vector<4x128xf32>
    %441 = arith.mulf %439, %440 : vector<4x128xf32>
    %cst_100 = arith.constant dense<0.000000e+00> : vector<4x128xf32>
    %442 = tpu.matmul %400, %1, %cst_100 {dimension_numbers = #tpu.dot_dimension_numbers<[1], [0], [0], [1], [0, 0, 1, 1], [], []>} : vector<4x32xf32>, vector<32x128xf32>, vector<4x128xf32> -> vector<4x128xf32>
    %443 = arith.addf %441, %442 : vector<4x128xf32>
    %444 = vector.broadcast %5 : vector<1x128xf32> to vector<4x128xf32>
    %445 = arith.addf %443, %444 : vector<4x128xf32>
    %446 = vector.extract_strided_slice %445 {offsets = [0, 0], sizes = [4, 32], strides = [1, 1]} : vector<4x128xf32> to vector<4x32xf32>
    %447 = arith.negf %446 : vector<4x32xf32>
    %448 = math.exp %447 : vector<4x32xf32>
    %cst_101 = arith.constant 1.000000e+00 : f32
    %449 = vector.broadcast %cst_101 : f32 to vector<4x32xf32>
    %450 = arith.addf %449, %448 : vector<4x32xf32>
    %451 = arith.divf %449, %450 : vector<4x32xf32>
    %452 = vector.extract_strided_slice %445 {offsets = [0, 32], sizes = [4, 32], strides = [1, 1]} : vector<4x128xf32> to vector<4x32xf32>
    %453 = arith.negf %452 : vector<4x32xf32>
    %454 = math.exp %453 : vector<4x32xf32>
    %cst_102 = arith.constant 1.000000e+00 : f32
    %455 = vector.broadcast %cst_102 : f32 to vector<4x32xf32>
    %456 = arith.addf %455, %454 : vector<4x32xf32>
    %457 = arith.divf %455, %456 : vector<4x32xf32>
    %458 = vector.extract_strided_slice %445 {offsets = [0, 64], sizes = [4, 32], strides = [1, 1]} : vector<4x128xf32> to vector<4x32xf32>
    %459 = math.tanh %458 : vector<4x32xf32>
    %460 = vector.extract_strided_slice %445 {offsets = [0, 96], sizes = [4, 32], strides = [1, 1]} : vector<4x128xf32> to vector<4x32xf32>
    %461 = arith.negf %460 : vector<4x32xf32>
    %462 = math.exp %461 : vector<4x32xf32>
    %cst_103 = arith.constant 1.000000e+00 : f32
    %463 = vector.broadcast %cst_103 : f32 to vector<4x32xf32>
    %464 = arith.addf %463, %462 : vector<4x32xf32>
    %465 = arith.divf %463, %464 : vector<4x32xf32>
    %466 = arith.mulf %457, %398 : vector<4x32xf32>
    %467 = arith.mulf %451, %459 : vector<4x32xf32>
    %468 = arith.addf %466, %467 : vector<4x32xf32>
    %469 = math.tanh %468 : vector<4x32xf32>
    %470 = arith.mulf %465, %469 : vector<4x32xf32>
    %471 = tpu.concatenate %470, %429 in 1 : vector<4x32xf32>, vector<4x32xf32> -> vector<4x64xf32>
    %cst_104 = arith.constant dense<0.000000e+00> : vector<4x128xf32>
    %472 = tpu.matmul %471, %3, %cst_104 {dimension_numbers = #tpu.dot_dimension_numbers<[1], [0], [0], [1], [0, 0, 1, 1], [], []>} : vector<4x64xf32>, vector<64x128xf32>, vector<4x128xf32> -> vector<4x128xf32>
    %473 = vector.broadcast %7 : vector<1x128xf32> to vector<4x128xf32>
    %474 = arith.addf %472, %473 : vector<4x128xf32>
    %475 = vector.extract_strided_slice %474 {offsets = [0, 0], sizes = [4, 32], strides = [1, 1]} : vector<4x128xf32> to vector<4x32xf32>
    %476 = arith.negf %475 : vector<4x32xf32>
    %477 = math.exp %476 : vector<4x32xf32>
    %cst_105 = arith.constant 1.000000e+00 : f32
    %478 = vector.broadcast %cst_105 : f32 to vector<4x32xf32>
    %479 = arith.addf %478, %477 : vector<4x32xf32>
    %480 = arith.divf %478, %479 : vector<4x32xf32>
    %481 = vector.extract_strided_slice %474 {offsets = [0, 32], sizes = [4, 32], strides = [1, 1]} : vector<4x128xf32> to vector<4x32xf32>
    %482 = arith.negf %481 : vector<4x32xf32>
    %483 = math.exp %482 : vector<4x32xf32>
    %cst_106 = arith.constant 1.000000e+00 : f32
    %484 = vector.broadcast %cst_106 : f32 to vector<4x32xf32>
    %485 = arith.addf %484, %483 : vector<4x32xf32>
    %486 = arith.divf %484, %485 : vector<4x32xf32>
    %487 = vector.extract_strided_slice %474 {offsets = [0, 64], sizes = [4, 32], strides = [1, 1]} : vector<4x128xf32> to vector<4x32xf32>
    %488 = math.tanh %487 : vector<4x32xf32>
    %489 = vector.extract_strided_slice %474 {offsets = [0, 96], sizes = [4, 32], strides = [1, 1]} : vector<4x128xf32> to vector<4x32xf32>
    %490 = arith.negf %489 : vector<4x32xf32>
    %491 = math.exp %490 : vector<4x32xf32>
    %cst_107 = arith.constant 1.000000e+00 : f32
    %492 = vector.broadcast %cst_107 : f32 to vector<4x32xf32>
    %493 = arith.addf %492, %491 : vector<4x32xf32>
    %494 = arith.divf %492, %493 : vector<4x32xf32>
    %495 = arith.mulf %486, %427 : vector<4x32xf32>
    %496 = arith.mulf %480, %488 : vector<4x32xf32>
    %497 = arith.addf %495, %496 : vector<4x32xf32>
    %498 = math.tanh %497 : vector<4x32xf32>
    %499 = arith.mulf %494, %498 : vector<4x32xf32>
    %cst_108 = arith.constant dense<0.000000e+00> : vector<4x6xf32>
    %500 = tpu.matmul %499, %8, %cst_108 {dimension_numbers = #tpu.dot_dimension_numbers<[1], [0], [0], [1], [0, 0, 1, 1], [], []>} : vector<4x32xf32>, vector<32x6xf32>, vector<4x6xf32> -> vector<4x6xf32>
    %501 = arith.addf %500, %14 : vector<4x6xf32>
    %502 = arith.index_cast %c6_i32 : i32 to index
    %c0_109 = arith.constant 0 : index
    %c0_110 = arith.constant 0 : index
    %503 = vector.load %arg10[%502, %c0_109, %c0_110] : memref<8x4x6xf32, #tpu.memory_space<vmem>>, vector<1x4x6xf32>
    %504 = vector.shape_cast %503 : vector<1x4x6xf32> to vector<4x6xf32>
    %505 = vector.shape_cast %501 : vector<4x6xf32> to vector<1x4x6xf32>
    tpu.vector_store %arg10[%502, %c0_109, %c0_110], %505 {strides = array<i32>} : memref<8x4x6xf32, #tpu.memory_space<vmem>>, vector<1x4x6xf32>,
    %c7_i32 = arith.constant 7 : i32
    %506 = arith.index_cast %c7_i32 : i32 to index
    %c0_111 = arith.constant 0 : index
    %c0_112 = arith.constant 0 : index
    %507 = vector.load %arg1[%506, %c0_111, %c0_112] : memref<8x4x1xf32, #tpu.memory_space<vmem>>, vector<1x4x1xf32>
    %508 = vector.shape_cast %507 : vector<1x4x1xf32> to vector<4x1xf32>
    %509 = vector.broadcast %508 : vector<4x1xf32> to vector<4x128xf32>
    %510 = vector.broadcast %0 : vector<1x128xf32> to vector<4x128xf32>
    %511 = arith.mulf %509, %510 : vector<4x128xf32>
    %cst_113 = arith.constant dense<0.000000e+00> : vector<4x128xf32>
    %512 = tpu.matmul %470, %1, %cst_113 {dimension_numbers = #tpu.dot_dimension_numbers<[1], [0], [0], [1], [0, 0, 1, 1], [], []>} : vector<4x32xf32>, vector<32x128xf32>, vector<4x128xf32> -> vector<4x128xf32>
    %513 = arith.addf %511, %512 : vector<4x128xf32>
    %514 = vector.broadcast %5 : vector<1x128xf32> to vector<4x128xf32>
    %515 = arith.addf %513, %514 : vector<4x128xf32>
    %516 = vector.extract_strided_slice %515 {offsets = [0, 0], sizes = [4, 32], strides = [1, 1]} : vector<4x128xf32> to vector<4x32xf32>
    %517 = arith.negf %516 : vector<4x32xf32>
    %518 = math.exp %517 : vector<4x32xf32>
    %cst_114 = arith.constant 1.000000e+00 : f32
    %519 = vector.broadcast %cst_114 : f32 to vector<4x32xf32>
    %520 = arith.addf %519, %518 : vector<4x32xf32>
    %521 = arith.divf %519, %520 : vector<4x32xf32>
    %522 = vector.extract_strided_slice %515 {offsets = [0, 32], sizes = [4, 32], strides = [1, 1]} : vector<4x128xf32> to vector<4x32xf32>
    %523 = arith.negf %522 : vector<4x32xf32>
    %524 = math.exp %523 : vector<4x32xf32>
    %cst_115 = arith.constant 1.000000e+00 : f32
    %525 = vector.broadcast %cst_115 : f32 to vector<4x32xf32>
    %526 = arith.addf %525, %524 : vector<4x32xf32>
    %527 = arith.divf %525, %526 : vector<4x32xf32>
    %528 = vector.extract_strided_slice %515 {offsets = [0, 64], sizes = [4, 32], strides = [1, 1]} : vector<4x128xf32> to vector<4x32xf32>
    %529 = math.tanh %528 : vector<4x32xf32>
    %530 = vector.extract_strided_slice %515 {offsets = [0, 96], sizes = [4, 32], strides = [1, 1]} : vector<4x128xf32> to vector<4x32xf32>
    %531 = arith.negf %530 : vector<4x32xf32>
    %532 = math.exp %531 : vector<4x32xf32>
    %cst_116 = arith.constant 1.000000e+00 : f32
    %533 = vector.broadcast %cst_116 : f32 to vector<4x32xf32>
    %534 = arith.addf %533, %532 : vector<4x32xf32>
    %535 = arith.divf %533, %534 : vector<4x32xf32>
    %536 = arith.mulf %527, %468 : vector<4x32xf32>
    %537 = arith.mulf %521, %529 : vector<4x32xf32>
    %538 = arith.addf %536, %537 : vector<4x32xf32>
    %539 = math.tanh %538 : vector<4x32xf32>
    %540 = arith.mulf %535, %539 : vector<4x32xf32>
    %541 = tpu.concatenate %540, %499 in 1 : vector<4x32xf32>, vector<4x32xf32> -> vector<4x64xf32>
    %cst_117 = arith.constant dense<0.000000e+00> : vector<4x128xf32>
    %542 = tpu.matmul %541, %3, %cst_117 {dimension_numbers = #tpu.dot_dimension_numbers<[1], [0], [0], [1], [0, 0, 1, 1], [], []>} : vector<4x64xf32>, vector<64x128xf32>, vector<4x128xf32> -> vector<4x128xf32>
    %543 = vector.broadcast %7 : vector<1x128xf32> to vector<4x128xf32>
    %544 = arith.addf %542, %543 : vector<4x128xf32>
    %545 = vector.extract_strided_slice %544 {offsets = [0, 0], sizes = [4, 32], strides = [1, 1]} : vector<4x128xf32> to vector<4x32xf32>
    %546 = arith.negf %545 : vector<4x32xf32>
    %547 = math.exp %546 : vector<4x32xf32>
    %cst_118 = arith.constant 1.000000e+00 : f32
    %548 = vector.broadcast %cst_118 : f32 to vector<4x32xf32>
    %549 = arith.addf %548, %547 : vector<4x32xf32>
    %550 = arith.divf %548, %549 : vector<4x32xf32>
    %551 = vector.extract_strided_slice %544 {offsets = [0, 32], sizes = [4, 32], strides = [1, 1]} : vector<4x128xf32> to vector<4x32xf32>
    %552 = arith.negf %551 : vector<4x32xf32>
    %553 = math.exp %552 : vector<4x32xf32>
    %cst_119 = arith.constant 1.000000e+00 : f32
    %554 = vector.broadcast %cst_119 : f32 to vector<4x32xf32>
    %555 = arith.addf %554, %553 : vector<4x32xf32>
    %556 = arith.divf %554, %555 : vector<4x32xf32>
    %557 = vector.extract_strided_slice %544 {offsets = [0, 64], sizes = [4, 32], strides = [1, 1]} : vector<4x128xf32> to vector<4x32xf32>
    %558 = math.tanh %557 : vector<4x32xf32>
    %559 = vector.extract_strided_slice %544 {offsets = [0, 96], sizes = [4, 32], strides = [1, 1]} : vector<4x128xf32> to vector<4x32xf32>
    %560 = arith.negf %559 : vector<4x32xf32>
    %561 = math.exp %560 : vector<4x32xf32>
    %cst_120 = arith.constant 1.000000e+00 : f32
    %562 = vector.broadcast %cst_120 : f32 to vector<4x32xf32>
    %563 = arith.addf %562, %561 : vector<4x32xf32>
    %564 = arith.divf %562, %563 : vector<4x32xf32>
    %565 = arith.mulf %556, %497 : vector<4x32xf32>
    %566 = arith.mulf %550, %558 : vector<4x32xf32>
    %567 = arith.addf %565, %566 : vector<4x32xf32>
    %568 = math.tanh %567 : vector<4x32xf32>
    %569 = arith.mulf %564, %568 : vector<4x32xf32>
    %cst_121 = arith.constant dense<0.000000e+00> : vector<4x6xf32>
    %570 = tpu.matmul %569, %8, %cst_121 {dimension_numbers = #tpu.dot_dimension_numbers<[1], [0], [0], [1], [0, 0, 1, 1], [], []>} : vector<4x32xf32>, vector<32x6xf32>, vector<4x6xf32> -> vector<4x6xf32>
    %571 = arith.addf %570, %14 : vector<4x6xf32>
    %572 = arith.index_cast %c7_i32 : i32 to index
    %c0_122 = arith.constant 0 : index
    %c0_123 = arith.constant 0 : index
    %573 = vector.load %arg10[%572, %c0_122, %c0_123] : memref<8x4x6xf32, #tpu.memory_space<vmem>>, vector<1x4x6xf32>
    %574 = vector.shape_cast %573 : vector<1x4x6xf32> to vector<4x6xf32>
    %575 = vector.shape_cast %571 : vector<4x6xf32> to vector<1x4x6xf32>
    tpu.vector_store %arg10[%572, %c0_122, %c0_123], %575 {strides = array<i32>} : memref<8x4x6xf32, #tpu.memory_space<vmem>>, vector<1x4x6xf32>,
    %c8_i32 = arith.constant 8 : i32
    %c0_124 = arith.constant 0 : index
    %c0_125 = arith.constant 0 : index
    %c0_126 = arith.constant 0 : index
    %576 = vector.load %arg11[%c0_124, %c0_125, %c0_126] : memref<2x4x32xf32, #tpu.memory_space<vmem>>, vector<1x4x32xf32>
    %577 = vector.shape_cast %576 : vector<1x4x32xf32> to vector<4x32xf32>
    %578 = vector.shape_cast %540 : vector<4x32xf32> to vector<1x4x32xf32>
    tpu.vector_store %arg11[%c0_124, %c0_125, %c0_126], %578 {strides = array<i32>} : memref<2x4x32xf32, #tpu.memory_space<vmem>>, vector<1x4x32xf32>,
    %c0_127 = arith.constant 0 : index
    %c0_128 = arith.constant 0 : index
    %c0_129 = arith.constant 0 : index
    %579 = vector.load %arg12[%c0_127, %c0_128, %c0_129] : memref<2x4x32xf32, #tpu.memory_space<vmem>>, vector<1x4x32xf32>
    %580 = vector.shape_cast %579 : vector<1x4x32xf32> to vector<4x32xf32>
    %581 = vector.shape_cast %538 : vector<4x32xf32> to vector<1x4x32xf32>
    tpu.vector_store %arg12[%c0_127, %c0_128, %c0_129], %581 {strides = array<i32>} : memref<2x4x32xf32, #tpu.memory_space<vmem>>, vector<1x4x32xf32>,
    %c1_130 = arith.constant 1 : index
    %c0_131 = arith.constant 0 : index
    %c0_132 = arith.constant 0 : index
    %582 = vector.load %arg11[%c1_130, %c0_131, %c0_132] : memref<2x4x32xf32, #tpu.memory_space<vmem>>, vector<1x4x32xf32>
    %583 = vector.shape_cast %582 : vector<1x4x32xf32> to vector<4x32xf32>
    %584 = vector.shape_cast %569 : vector<4x32xf32> to vector<1x4x32xf32>
    tpu.vector_store %arg11[%c1_130, %c0_131, %c0_132], %584 {strides = array<i32>} : memref<2x4x32xf32, #tpu.memory_space<vmem>>, vector<1x4x32xf32>,
    %c1_133 = arith.constant 1 : index
    %c0_134 = arith.constant 0 : index
    %c0_135 = arith.constant 0 : index
    %585 = vector.load %arg12[%c1_133, %c0_134, %c0_135] : memref<2x4x32xf32, #tpu.memory_space<vmem>>, vector<1x4x32xf32>
    %586 = vector.shape_cast %585 : vector<1x4x32xf32> to vector<4x32xf32>
    %587 = vector.shape_cast %567 : vector<4x32xf32> to vector<1x4x32xf32>
    tpu.vector_store %arg12[%c1_133, %c0_134, %c0_135], %587 {strides = array<i32>} : memref<2x4x32xf32, #tpu.memory_space<vmem>>, vector<1x4x32xf32>,
    return
  }
  func.func @transform_0(%arg0: i32) -> (i32, i32, i32) {
    %c0_i32 = arith.constant 0 : i32
    %c0_i32_0 = arith.constant 0 : i32
    %c0_i32_1 = arith.constant 0 : i32
    %c0_i32_2 = arith.constant 0 : i32
    return %c0_i32, %c0_i32_0, %c0_i32_1 : i32, i32, i32
  }
  func.func @transform_1(%arg0: i32) -> (i32, i32) {
    %c0_i32 = arith.constant 0 : i32
    %c0_i32_0 = arith.constant 0 : i32
    %c0_i32_1 = arith.constant 0 : i32
    return %c0_i32, %c0_i32_0 : i32, i32
  }
  func.func @transform_2(%arg0: i32) -> (i32, i32) {
    %c0_i32 = arith.constant 0 : i32
    %c0_i32_0 = arith.constant 0 : i32
    %c0_i32_1 = arith.constant 0 : i32
    return %c0_i32, %c0_i32_0 : i32, i32
  }
  func.func @transform_3(%arg0: i32) -> (i32, i32) {
    %c0_i32 = arith.constant 0 : i32
    %c0_i32_0 = arith.constant 0 : i32
    %c0_i32_1 = arith.constant 0 : i32
    return %c0_i32, %c0_i32_0 : i32, i32
  }
  func.func @transform_4(%arg0: i32) -> (i32, i32, i32) {
    %c0_i32 = arith.constant 0 : i32
    %c0_i32_0 = arith.constant 0 : i32
    %c0_i32_1 = arith.constant 0 : i32
    %c0_i32_2 = arith.constant 0 : i32
    return %c0_i32, %c0_i32_0, %c0_i32_1 : i32, i32, i32
  }
  func.func @transform_5(%arg0: i32) -> (i32, i32, i32) {
    %c0_i32 = arith.constant 0 : i32
    %c0_i32_0 = arith.constant 0 : i32
    %c0_i32_1 = arith.constant 0 : i32
    %c0_i32_2 = arith.constant 0 : i32
    return %c0_i32, %c0_i32_0, %c0_i32_1 : i32, i32, i32
  }
  func.func @transform_6(%arg0: i32) -> (i32, i32) {
    %c0_i32 = arith.constant 0 : i32
    %c0_i32_0 = arith.constant 0 : i32
    %c0_i32_1 = arith.constant 0 : i32
    return %c0_i32, %c0_i32_0 : i32, i32
  }
  func.func @transform_7(%arg0: i32) -> (i32, i32) {
    %c0_i32 = arith.constant 0 : i32
    %c0_i32_0 = arith.constant 0 : i32
    %c0_i32_1 = arith.constant 0 : i32
    return %c0_i32, %c0_i32_0 : i32, i32
  }
  func.func @transform_8(%arg0: i32) -> (i32, i32) {
    %c0_i32 = arith.constant 0 : i32
    %c0_i32_0 = arith.constant 0 : i32
    %c0_i32_1 = arith.constant 0 : i32
    return %c0_i32, %c0_i32_0 : i32, i32
  }
  func.func @transform_9(%arg0: i32) -> (i32, i32, i32) {
    %c0_i32 = arith.constant 0 : i32
    %c0_i32_0 = arith.constant 0 : i32
    %c0_i32_1 = arith.constant 0 : i32
    %c0_i32_2 = arith.constant 0 : i32
    return %c0_i32, %c0_i32_0, %c0_i32_1 : i32, i32, i32
  }
  func.func @transform_10(%arg0: i32) -> (i32, i32, i32) {
    %c0_i32 = arith.constant 0 : i32
    %c0_i32_0 = arith.constant 0 : i32
    %c0_i32_1 = arith.constant 0 : i32
    %c0_i32_2 = arith.constant 0 : i32
    return %c0_i32, %c0_i32_0, %c0_i32_1 : i32, i32, i32
  }
  func.func @transform_11(%arg0: i32) -> (i32, i32, i32) {
    %c0_i32 = arith.constant 0 : i32
    %c0_i32_0 = arith.constant 0 : i32
    %c0_i32_1 = arith.constant 0 : i32
    %c0_i32_2 = arith.constant 0 : i32
    return %c0_i32, %c0_i32_0, %c0_i32_1 : i32, i32, i32
  }
}

</mosaic_0001>

<bundles_post_ra>
// kernel: tpu_custom_call.1
= control target key start
LH: loop header
LB: loop body
LE: loop exit
PB: predicated region body
PF: predicated region fallthrough
CT: control target
= control target key end

     0   :  { %17 = vsyncpa [#allocation3], 0  ;;  %s2482_s0 = inlined_call_operand.vmem [shape: f32[8,4,1], index: 0, kind: input, shape index: {}]   ;;  %s2483_s1 = inlined_call_operand.hbm [shape: f32[4,8], index: 1, kind: input, shape index: {}]   ;;  %s2484_s2 = inlined_call_operand.hbm [shape: f32[1,128], index: 2, kind: input, shape index: {}]   ;;  %s2485_s3 = inlined_call_operand.hbm [shape: f32[32,128], index: 3, kind: input, shape index: {}]   ;;  %s2486_s4 = inlined_call_operand.vmem [shape: f32[1,64,128], index: 4, kind: input, shape index: {}]   ;;  %s2487_s5 = inlined_call_operand.hbm [shape: f32[2,1,128], index: 5, kind: input, shape index: {}]   ;;  %s2488_s6 = inlined_call_operand.vmem [shape: f32[32,6], index: 6, kind: input, shape index: {}]   ;;  %s2489_s7 = inlined_call_operand.vmem [shape: f32[8,6], index: 7, kind: input, shape index: {}]   ;;  %s2490_s8 = inlined_call_operand.vmem [shape: f32[1,6], index: 8, kind: input, shape index: {}]   ;;  %s2491_s9 = inlined_call_operand.vmem [shape: f32[8,4,6], index: 9, kind: output, shape index: {0}]   ;;  %s2492_s10 = inlined_call_operand.hbm [shape: f32[2,4,32], index: 10, kind: output, shape index: {1}]   ;;  %s2493_s11 = inlined_call_operand.hbm [shape: f32[2,4,32], index: 11, kind: output, shape index: {2}]  }
   0x1   :  { %18 = vsyncpa [#allocation6], 0 }
   0x2   :  { %19 = vsyncpa [#allocation9], 0 }
   0x3   :  { %20 = vsyncpa [#allocation4], 0  ;;  %s40_s19 = sshll.u32 %s2484_s2, 4  ;;  %s41_s19 = int_to_ptr.hbm [resolvable:$true] %s40_s19 }
   0x4   :  { %21 = vsyncpa [#allocation12], 0  ;;  %s1886_s20 = smov [#allocation5]   ;;  %s29_s24 = sshll.u32 %s2483_s1, 4  ;;  %s30_s24 = int_to_ptr.hbm [resolvable:$true] %s29_s24 }
   0x5   :  { %s42_s21 = sshll.u32 %s1886_s20, 4  ;;  %s1887_s25 = smov [#allocation2]   ;;  %s43_s21 = int_to_ptr.vmem [resolvable:$true] %s42_s21 }
   0x6   :  { %45 = dma.hbm_to_vmem [thread:$0]  %s41_s19, 16, %s43_s21, [#allocation6]  }
   0x7   :  { %s31_s26 = sshll.u32 %s1887_s25, 4  ;;  %s50_s29 = sshll.u32 %s2485_s3, 4  ;;  %s32_s26 = int_to_ptr.vmem [resolvable:$true] %s31_s26  ;;  %s51_s29 = int_to_ptr.hbm [resolvable:$true] %s50_s29 }
   0x8   :  { %34 = dma.hbm_to_vmem [thread:$0]  %s30_s24, 64, %s32_s26, [#allocation3]  }
   0x9   :  { %s1888_s2 = smov [#allocation7]   ;;  %s65_s14 = sshll.u32 %s2487_s5, 4  ;;  %s66_s14 = int_to_ptr.hbm [resolvable:$true] %s65_s14 }
   0xa   :  { %s52_s30 = sshll.u32 %s1888_s2, 4  ;;  %s1889_s15 = smov 128   ;;  %s53_s30 = int_to_ptr.vmem [resolvable:$true] %s52_s30 }
   0xb   :  { %s1890_s1 = smov 8   ;;  %s1891_s16 = smov [#allocation8]  }
   0xc   :  { %58 = dma.hbm_to_vmem [thread:$0]  %s51_s29, 512, %s53_s30, [#allocation6], %s1889_s15, %s1889_s15, %s1890_s1  }
   0xd   :  { %s67_s17 = sshll.u32 %s1891_s16, 4  ;;  %s1892_s18 = smov 16   ;;  %s68_s17 = int_to_ptr.vmem [resolvable:$true] %s67_s17 }
   0xe   :  { %s1893_s19 = smov 1  }
   0xf   :  { %73 = dma.hbm_to_vmem [thread:$0]  %s66_s14, 32, %s68_s17, [#allocation9], %s1892_s18, %s1892_s18, %s1893_s19  }
  0x10   :  { %1876 = dma.done.wait [#allocation3], 64  }
  0x11   :  { %1877 = vsyncadd [#allocation3], 4294967232 }
  0x12   :  { %1878 = dma.done.wait [#allocation6], 528  }
  0x13   :  { %1879 = vsyncadd [#allocation6], 4294966768 }
  0x14   :  { %1880 = dma.done.wait [#allocation9], 32  }
  0x15   :  { %1881 = vsyncadd [#allocation9], 4294967264  ;;  %v1894_v0 = vmov 0   ;;  %vm122_vm0 = vcmask 64512   ;;  %v117_v1 = vld [vmem:[%s2489_s7] sm:$0xff]  ;;  %v1979_v4 = vld [vmem:[#allocation7 + $0x10] sm:$0xff] }
  0x16   :  { %1595 = vset.pattern.permute.xlu0 %v1894_v0  ;;  %1596 = vset.pattern.permute.xlu2 %v1894_v0  ;;  %v116_v2 = vld [vmem:[#allocation2] sm:$0xf]  ;;  %v1985_v6 = vld [vmem:[#allocation7 + $0x8] sm:$0xff]  ;;  %v1988_v7 = vld [vmem:[#allocation7] sm:$0xff]  ;;  %v1895_v8 = vmov 0.0   ;;  %s1896_s7 = smov 64  }
  0x17   :  { %v1977_v3 = vld [vmem:[#allocation7 + $0x18] sm:$0xff]  ;;  %141 = vmatpush.msra.mxu0 %v117_v1  ;;  %v2005_v13 = vld [vmem:[#allocation8] ss:$0 sm:$0xff]  ;;  %s1897_s22 = smov 32   ;;  %v2022_v38 = vld [vmem:[%s2486_s4 + $0x30] sm:$0xff]  ;;  %vm156_vm5 = vcmask 261120  }
  0x18   :  { %1525 = vmatmul.msk.f32.vlgmr.msra.gmra.mxu0 %vm122_vm0, %v116_v2  ;;  %v146_v5 = vld [vmem:[%s2482_s0] sm:$0xf]  ;;  %v2002_v10 = vld [vmem:[#allocation5] ss:$0 sm:$0xff]  ;;  %v2017_v37 = vld [vmem:[%s2486_s4 + $0x38] sm:$0xff]  ;;  %vm230_vm6 = vcmask 523264  }
  0x19   :  { %172 = vmatpush.msrb.mxu0 %v1977_v3  ;;  %149 = vperm.xlu0 %1595, %v146_v5   ;;  %v2029_v39 = vld [vmem:[%s2486_s4 + $0x28] sm:$0xff]  ;;  %v2036_v40 = vld [vmem:[%s2486_s4 + $0x20] sm:$0xff]  ;;  %v2043_v41 = vld [vmem:[%s2486_s4 + $0x18] sm:$0xff]  ;;  %s1490_s26 = sshll.u32 %s2492_s10, 4  ;;  %s1900_s27 = smov [#allocation11]   ;;  %s1491_s26 = int_to_ptr.hbm [resolvable:$true] %s1490_s26 }
  0x1a   :  { %242 = vmatpush.msra.mxu2 %v2017_v37  ;;  %406 = vmatpush.msra.mxu1 %v2017_v37  ;;  %v2050_v42 = vld [vmem:[%s2486_s4 + $0x10] sm:$0xff]  ;;  %v2057_v43 = vld [vmem:[%s2486_s4 + $0x8] sm:$0xff]  ;;  %v2067_v46 = vld [vmem:[%s2486_s4] sm:$0xff]  ;;  %s1501_s28 = sshll.u32 %s1900_s27, 4  ;;  %s1901_s29 = smov 4   ;;  %s1502_s28 = int_to_ptr.vmem [resolvable:$true] %s1501_s28 }
  0x1b   :  { %173 = vmatpush.msrb.mxu0 %v1979_v4  ;;  %v1530_v47 = vld [vmem:[%s2482_s0 + $0x4] sm:$0xf]  ;;  %s1503_s30 = sshll.u32 %s2493_s11, 4  ;;  %s1504_s30 = int_to_ptr.hbm [resolvable:$true] %s1503_s30 }
  0x1c   :  { %243 = vmatpush.msra.mxu2 %v2022_v38  ;;  %407 = vmatpush.msra.mxu1 %v2022_v38  ;;  %v2107_v55 = vld [vmem:[#allocation8 + $0x1] ss:$0 sm:$0xff] }
  0x1d   :  { %174 = vmatpush.msrb.mxu0 %v1985_v6 }
  0x1e   :  { %244 = vmatpush.msra.mxu2 %v2029_v39  ;;  %408 = vmatpush.msra.mxu1 %v2029_v39 }
  0x1f   :  { %175 = vmatpush.msrb.mxu0 %v1988_v7 }
  0x20   :  { %176 = vmatmul.f32.vlgmr.msrb.gmra.mxu0 %v1895_v8  ;;  %245 = vmatpush.msra.mxu2 %v2036_v40 }
  0x21   :  { %340 = vmatpush.msra.mxu0 %v1977_v3  ;;  %409 = vmatpush.msra.mxu1 %v2036_v40 }
  0x22   :  { %246 = vmatpush.msra.mxu2 %v2043_v41 }
  0x23   :  { %341 = vmatpush.msra.mxu0 %v1979_v4  ;;  %410 = vmatpush.msra.mxu1 %v2043_v41 }
  0x24   :  { %247 = vmatpush.msra.mxu2 %v2050_v42 }
  0x25   :  { %342 = vmatpush.msra.mxu0 %v1985_v6  ;;  %411 = vmatpush.msra.mxu1 %v2050_v42 }
  0x26   :  { %248 = vmatpush.msra.mxu2 %v2057_v43 }
  0x27   :  { %343 = vmatpush.msra.mxu0 %v1988_v7  ;;  %412 = vmatpush.msra.mxu1 %v2057_v43 }
  0x28   :  { %249 = vmatpush.msra.mxu2 %v2067_v46 }
  0x29   :  { %504 = vmatpush.msrb.mxu0 %v1977_v3  ;;  %413 = vmatpush.msra.mxu1 %v2067_v46 }
  0x2a   :  { %570 = vmatpush.msrb.mxu2 %v2017_v37 }
  0x2b   :  { %505 = vmatpush.msrb.mxu0 %v1979_v4  ;;  %734 = vmatpush.msrb.mxu1 %v2017_v37 }
  0x2c   :  { %571 = vmatpush.msrb.mxu2 %v2022_v38 }
  0x2d   :  { %506 = vmatpush.msrb.mxu0 %v1985_v6  ;;  %735 = vmatpush.msrb.mxu1 %v2022_v38 }
  0x2e   :  { %572 = vmatpush.msrb.mxu2 %v2029_v39 }
  0x2f   :  { %507 = vmatpush.msrb.mxu0 %v1988_v7  ;;  %736 = vmatpush.msrb.mxu1 %v2029_v39 }
  0x30   :  { %573 = vmatpush.msrb.mxu2 %v2036_v40 }
  0x31   :  { %737 = vmatpush.msrb.mxu1 %v2036_v40 }
  0x32   :  { %574 = vmatpush.msrb.mxu2 %v2043_v41 }
  0x33   :  { %738 = vmatpush.msrb.mxu1 %v2043_v41 }
  0x34   :  { %575 = vmatpush.msrb.mxu2 %v2050_v42 }
  0x35   :  { %739 = vmatpush.msrb.mxu1 %v2050_v42 }
  0x36   :  { %576 = vmatpush.msrb.mxu2 %v2057_v43 }
  0x37   :  { %740 = vmatpush.msrb.mxu1 %v2057_v43 }
  0x38   :  { %577 = vmatpush.msrb.mxu2 %v2067_v46 }
  0x39   :  { %741 = vmatpush.msrb.mxu1 %v2067_v46 }
  0x8b   :  { %v150_v11 = vpop.permute.xlu0 %149 }
  0x8c   :  { %v155_v12 = vmul.f32 %v2002_v10, %v150_v11 }
  0x95   :  { %v2000_v9 = vpop.f32.mrf.mxu0 }
  0x9d   :  { %v177_v14 = vpop.f32.mrf.mxu0 }
  0x9e   :  { %v180_v15 = vadd.f32 %v177_v14, %v155_v12 }
  0xa0   :  { %v184_v16 = vadd.f32 %v2005_v13, %v180_v15 }
  0xa2   :  { %1601 = vtanh.f32 %v184_v16  ;;  %v1526_v18 = vmul.f32 -1.442695, %v184_v16 }
  0xa4   :  { %1603 = vpow2.f32 %v1526_v18 }
  0xa8   :  { %v1602_v17 = vpop.eup %1601 }
  0xa9   :  { %207 = vrot.lane.b32.xlu0 %v1602_v17, %s1896_s7 }
  0xaa   :  { %v1604_v19 = vpop.eup %1603 }
  0xab   :  { %v188_v20 = vadd.f32 1.0, %v1604_v19 }
  0xad   :  { %1605 = vrcp.f32 %v188_v20  ;;  %v200_v26 = vand.u32 2147483648, %v188_v20  ;;  %vm194_vm2 = vweird.f32 %v188_v20  ;;  %v198_v27 = vand.u32 2147483647, %v188_v20 }
  0xaf   :  { %v201_v29 = vor.u32 1.1754944e-38, %v200_v26  ;;  %vm199_vm4 = vcmp.eq.f32.partialorder %v198_v27, 8.507059e+37 }
  0xb3   :  { %v1606_v21 = vpop.eup %1605 }
  0xb4   :  { %v190_v22 = vmul.f32 %v1606_v21, %v188_v20  ;;  %vm195_vm1 = vweird.f32 %v1606_v21 }
  0xb5   :  { %vm196_vm3 = vmor %vm194_vm2, %vm195_vm1 }
  0xb6   :  { %v191_v23 = vsub.f32 1.0, %v190_v22 }
  0xb8   :  { %v192_v24 = vmul.f32 %v1606_v21, %v191_v23 }
  0xba   :  { %v193_v25 = vadd.f32 %v1606_v21, %v192_v24 }
  0xbc   :  { %v197_v28 = vsel %vm196_vm3, %v1606_v21, %v193_v25 }
  0xbd   :  { %v202_v31 = vsel %vm199_vm4, %v201_v29, %v197_v28 }
  0xbe   :  { %v205_v33 = vmul.f32 0.0, %v202_v31 }
 0x11b   :  { %v208_v30 = vpop.permute.xlu0 %207 }
 0x11c   :  { %v210_v32 = vmul.f32 %v208_v30, %v202_v31 }
 0x11e   :  { %212 = vrot.lane.b32.xlu1 %v210_v32, %s1897_s22 }
 0x190   :  { %v213_v34 = vpop.permute.xlu1 %212 }
 0x191   :  { %v2010_v35 = vadd.f32 %v213_v34, %v205_v33 }
 0x193   :  { %1607 = vtanh.f32 %v2010_v35 }
 0x199   :  { %v1608_v36 = vpop.eup %1607 }
 0x19a   :  { %218 = vrot.lane.b32.xlu1 %v1608_v36, %s1896_s7 }
 0x20c   :  { %v219_v44 = vpop.permute.xlu1 %218 }
 0x20d   :  { %v221_v45 = vmul.f32 %v219_v44, %v202_v31 }
 0x20f   :  { %223 = vrot.lane.b32.xlu2 %v221_v45, %s1897_s22 }
 0x217   :  { %322 = vperm.xlu2 %1596, %v1530_v47  }
 0x269   :  { %v224_v48 = vpop.permute.xlu2 %223 }
 0x26a   :  { %1531 = vmatmul.msk.f32.vlgmr.msra.gmra.mxu0 %vm156_vm5, %v224_v48  ;;  %v226_v49 = vsel %vm156_vm5, %v224_v48, 0.0 }
 0x26b   :  { %1527 = vmatmul.msk.f32.vlgmr.msra.gmra.mxu2 %vm230_vm6, %v226_v49  ;;  %668 = vmatpush.msra.mxu0 %v1977_v3 }
 0x26c   :  { %898 = vmatpush.msra.mxu2 %v2017_v37 }
 0x26d   :  { %669 = vmatpush.msra.mxu0 %v1979_v4 }
 0x26e   :  { %899 = vmatpush.msra.mxu2 %v2022_v38 }
 0x26f   :  { %670 = vmatpush.msra.mxu0 %v1985_v6 }
 0x270   :  { %900 = vmatpush.msra.mxu2 %v2029_v39 }
 0x271   :  { %671 = vmatpush.msra.mxu0 %v1988_v7  ;;  %v323_v50 = vpop.permute.xlu2 %322 }
 0x272   :  { %901 = vmatpush.msra.mxu2 %v2036_v40  ;;  %v325_v51 = vmul.f32 %v2002_v10, %v323_v50 }
 0x274   :  { %902 = vmatpush.msra.mxu2 %v2043_v41 }
 0x276   :  { %903 = vmatpush.msra.mxu2 %v2050_v42 }
 0x278   :  { %904 = vmatpush.msra.mxu2 %v2057_v43 }
 0x27a   :  { %905 = vmatpush.msra.mxu2 %v2067_v46 }
 0x2e7   :  { %v345_v52 = vpop.f32.mrf.mxu0 }
 0x2e8   :  { %v348_v53 = vadd.f32 %v345_v52, %v325_v51 }
 0x2ea   :  { %v349_v54 = vadd.f32 %v2005_v13, %v348_v53 }
 0x2ec   :  { %1609 = vtanh.f32 %v349_v54  ;;  %v1532_v60 = vmul.f32 -1.442695, %v349_v54 }
 0x2ee   :  { %v251_v56 = vpop.f32.mrf.mxu2 }
 0x2ef   :  { %v252_v57 = vadd.f32 %v2107_v55, %v251_v56 }
 0x2f1   :  { %1611 = vtanh.f32 %v252_v57  ;;  %v1528_v61 = vmul.f32 -1.442695, %v252_v57 }
 0x2f2   :  { %v1610_v58 = vpop.eup %1609  ;;  %1613 = vpow2.f32 %v1532_v60 }
 0x2f3   :  { %372 = vrot.lane.b32.xlu0 %v1610_v58, %s1896_s7  ;;  %1615 = vpow2.f32 %v1528_v61 }
 0x2f7   :  { %v1612_v59 = vpop.eup %1611 }
 0x2f8   :  { %276 = vrot.lane.b32.xlu1 %v1612_v59, %s1896_s7  ;;  %v1614_v62 = vpop.eup %1613 }
 0x2f9   :  { %v353_v63 = vadd.f32 1.0, %v1614_v62  ;;  %v1616_v0 = vpop.eup %1615 }
 0x2fa   :  { %v257_v1 = vadd.f32 1.0, %v1616_v0 }
 0x2fb   :  { %1617 = vrcp.f32 %v353_v63  ;;  %v365_v17 = vand.u32 2147483648, %v353_v63  ;;  %vm359_vm8 = vweird.f32 %v353_v63  ;;  %v363_v19 = vand.u32 2147483647, %v353_v63 }
 0x2fc   :  { %1619 = vrcp.f32 %v257_v1  ;;  %v269_v23 = vand.u32 2147483648, %v257_v1  ;;  %vm263_vm12 = vweird.f32 %v257_v1  ;;  %v267_v26 = vand.u32 2147483647, %v257_v1 }
 0x2fd   :  { %v366_v21 = vor.u32 1.1754944e-38, %v365_v17  ;;  %vm364_vm11 = vcmp.eq.f32.partialorder %v363_v19, 8.507059e+37 }
 0x2fe   :  { %v270_v29 = vor.u32 1.1754944e-38, %v269_v23  ;;  %vm268_vm14 = vcmp.eq.f32.partialorder %v267_v26, 8.507059e+37 }
 0x301   :  { %v1618_v2 = vpop.eup %1617 }
 0x302   :  { %v355_v5 = vmul.f32 %v1618_v2, %v353_v63  ;;  %v1620_v8 = vpop.eup %1619  ;;  %vm360_vm7 = vweird.f32 %v1618_v2 }
 0x303   :  { %v259_v12 = vmul.f32 %v1620_v8, %v257_v1  ;;  %vm361_vm9 = vmor %vm359_vm8, %vm360_vm7  ;;  %vm264_vm10 = vweird.f32 %v1620_v8 }
 0x304   :  { %v356_v11 = vsub.f32 1.0, %v355_v5  ;;  %vm265_vm13 = vmor %vm263_vm12, %vm264_vm10 }
 0x305   :  { %v260_v15 = vsub.f32 1.0, %v259_v12 }
 0x306   :  { %v357_v14 = vmul.f32 %v1618_v2, %v356_v11 }
 0x307   :  { %v261_v18 = vmul.f32 %v1620_v8, %v260_v15 }
 0x308   :  { %v358_v16 = vadd.f32 %v1618_v2, %v357_v14 }
 0x309   :  { %v262_v22 = vadd.f32 %v1620_v8, %v261_v18 }
 0x30a   :  { %v362_v20 = vsel %vm361_vm9, %v1618_v2, %v358_v16 }
 0x30b   :  { %v367_v25 = vsel %vm364_vm11, %v366_v21, %v362_v20  ;;  %v266_v28 = vsel %vm265_vm13, %v1620_v8, %v262_v22 }
 0x30c   :  { %v271_v31 = vsel %vm268_vm14, %v270_v29, %v266_v28  ;;  %v370_v33 = vmul.f32 %v367_v25, %v2010_v35  ;;  %v1537_v35 = vld [vmem:[%s2482_s0 + $0x8] sm:$0xf] }
 0x30d   :  { %v274_v45 = vmul.f32 0.0, %v271_v31 }
 0x365   :  { %v373_v24 = vpop.permute.xlu0 %372 }
 0x366   :  { %v375_v27 = vmul.f32 %v373_v24, %v367_v25 }
 0x368   :  { %377 = vrot.lane.b32.xlu2 %v375_v27, %s1897_s22 }
 0x36a   :  { %v277_v30 = vpop.permute.xlu1 %276 }
 0x36b   :  { %v279_v32 = vmul.f32 %v277_v30, %v271_v31 }
 0x36d   :  { %281 = vrot.lane.b32.xlu0 %v279_v32, %s1897_s22 }
 0x3c2   :  { %v378_v34 = vpop.permute.xlu2 %377 }
 0x3c3   :  { %v2115_v36 = vadd.f32 %v378_v34, %v370_v33 }
 0x3c5   :  { %1621 = vtanh.f32 %v2115_v36 }
 0x3cb   :  { %v1622_v44 = vpop.eup %1621 }
 0x3cc   :  { %383 = vrot.lane.b32.xlu1 %v1622_v44, %s1896_s7 }
 0x3df   :  { %v282_v47 = vpop.permute.xlu0 %281 }
 0x3e0   :  { %v2119_v48 = vadd.f32 %v282_v47, %v274_v45 }
 0x3e2   :  { %1623 = vtanh.f32 %v2119_v48 }
 0x3e8   :  { %v1624_v49 = vpop.eup %1623 }
 0x3e9   :  { %287 = vrot.lane.b32.xlu2 %v1624_v49, %s1896_s7 }
 0x3f1   :  { %486 = vperm.xlu2 %1596, %v1537_v35  }
 0x43e   :  { %v384_v50 = vpop.permute.xlu1 %383 }
 0x43f   :  { %v386_v51 = vmul.f32 %v384_v50, %v367_v25 }
 0x441   :  { %388 = vrot.lane.b32.xlu0 %v386_v51, %s1897_s22 }
 0x443   :  { %v288_v52 = vpop.permute.xlu2 %287 }
 0x444   :  { %v2127_v53 = vmul.f32 %v288_v52, %v271_v31 }
 0x446   :  { %391 = vrot.lane.b32.xlu1 %v2127_v53, %s1896_s7 }
 0x44b   :  { %v487_v58 = vpop.permute.xlu2 %486 }
 0x44c   :  { %v489_v59 = vmul.f32 %v2002_v10, %v487_v58 }
 0x4b3   :  { %v389_v54 = vpop.permute.xlu0 %388 }
 0x4b4   :  { %1538 = vmatmul.msk.f32.vlgmr.msrb.gmra.mxu0 %vm156_vm5, %v389_v54 }
 0x4b5   :  { %832 = vmatpush.msrb.mxu0 %v1977_v3 }
 0x4b7   :  { %833 = vmatpush.msrb.mxu0 %v1979_v4 }
 0x4b8   :  { %v392_v56 = vpop.permute.xlu1 %391 }
 0x4b9   :  { %v394_v57 = vsel %vm156_vm5, %v389_v54, %v392_v56  ;;  %834 = vmatpush.msrb.mxu0 %v1985_v6 }
 0x4ba   :  { %1533 = vmatmul.msk.f32.vlgmr.msra.gmra.mxu1 %vm230_vm6, %v394_v57 }
 0x4bb   :  { %835 = vmatpush.msrb.mxu0 %v1988_v7  ;;  %1062 = vmatpush.msra.mxu1 %v2017_v37 }
 0x4bd   :  { %1063 = vmatpush.msra.mxu1 %v2022_v38 }
 0x4bf   :  { %1064 = vmatpush.msra.mxu1 %v2029_v39 }
 0x4c1   :  { %1065 = vmatpush.msra.mxu1 %v2036_v40 }
 0x4c3   :  { %1066 = vmatpush.msra.mxu1 %v2043_v41 }
 0x4c5   :  { %1067 = vmatpush.msra.mxu1 %v2050_v42 }
 0x4c7   :  { %1068 = vmatpush.msra.mxu1 %v2057_v43 }
 0x4c9   :  { %1069 = vmatpush.msra.mxu1 %v2067_v46 }
 0x531   :  { %v509_v60 = vpop.f32.mrf.mxu0 }
 0x532   :  { %v512_v61 = vadd.f32 %v509_v60, %v489_v59 }
 0x534   :  { %v513_v62 = vadd.f32 %v2005_v13, %v512_v61 }
 0x536   :  { %1625 = vtanh.f32 %v513_v62  ;;  %v1539_v5 = vmul.f32 -1.442695, %v513_v62 }
 0x537   :  { %v415_v63 = vpop.f32.mrf.mxu1 }
 0x538   :  { %v416_v0 = vadd.f32 %v2107_v55, %v415_v63 }
 0x53a   :  { %1627 = vtanh.f32 %v416_v0  ;;  %v1534_v8 = vmul.f32 -1.442695, %v416_v0 }
 0x53b   :  { %1629 = vpow2.f32 %v1539_v5 }
 0x53c   :  { %v1626_v1 = vpop.eup %1625  ;;  %1631 = vpow2.f32 %v1534_v8 }
 0x53d   :  { %536 = vrot.lane.b32.xlu1 %v1626_v1, %s1896_s7 }
 0x540   :  { %v1628_v2 = vpop.eup %1627 }
 0x541   :  { %440 = vrot.lane.b32.xlu0 %v1628_v2, %s1896_s7  ;;  %v1630_v11 = vpop.eup %1629 }
 0x542   :  { %v517_v12 = vadd.f32 1.0, %v1630_v11  ;;  %v1632_v14 = vpop.eup %1631 }
 0x543   :  { %v421_v15 = vadd.f32 1.0, %v1632_v14 }
 0x544   :  { %1633 = vrcp.f32 %v517_v12  ;;  %v529_v25 = vand.u32 2147483648, %v517_v12  ;;  %vm523_vm0 = vweird.f32 %v517_v12  ;;  %v527_v26 = vand.u32 2147483647, %v517_v12 }
 0x545   :  { %1635 = vrcp.f32 %v421_v15  ;;  %v433_v30 = vand.u32 2147483648, %v421_v15  ;;  %vm427_vm4 = vweird.f32 %v421_v15  ;;  %v431_v31 = vand.u32 2147483647, %v421_v15 }
 0x546   :  { %v530_v29 = vor.u32 1.1754944e-38, %v529_v25  ;;  %vm528_vm3 = vcmp.eq.f32.partialorder %v527_v26, 8.507059e+37 }
 0x547   :  { %v434_v45 = vor.u32 1.1754944e-38, %v433_v30  ;;  %vm432_vm8 = vcmp.eq.f32.partialorder %v431_v31, 8.507059e+37 }
 0x54a   :  { %v1634_v16 = vpop.eup %1633 }
 0x54b   :  { %v519_v17 = vmul.f32 %v1634_v16, %v517_v12  ;;  %v1636_v18 = vpop.eup %1635  ;;  %vm524_vm15 = vweird.f32 %v1634_v16 }
 0x54c   :  { %v423_v20 = vmul.f32 %v1636_v18, %v421_v15  ;;  %vm525_vm1 = vmor %vm523_vm0, %vm524_vm15  ;;  %vm428_vm2 = vweird.f32 %v1636_v18 }
 0x54d   :  { %v520_v19 = vsub.f32 1.0, %v519_v17  ;;  %vm429_vm7 = vmor %vm427_vm4, %vm428_vm2 }
 0x54e   :  { %v424_v22 = vsub.f32 1.0, %v423_v20 }
 0x54f   :  { %v521_v21 = vmul.f32 %v1634_v16, %v520_v19 }
 0x550   :  { %v425_v24 = vmul.f32 %v1636_v18, %v424_v22 }
 0x551   :  { %v522_v23 = vadd.f32 %v1634_v16, %v521_v21 }
 0x552   :  { %v426_v28 = vadd.f32 %v1636_v18, %v425_v24 }
 0x553   :  { %v526_v27 = vsel %vm525_vm1, %v1634_v16, %v522_v23 }
 0x554   :  { %v531_v32 = vsel %vm528_vm3, %v530_v29, %v526_v27  ;;  %v430_v44 = vsel %vm429_vm7, %v1636_v18, %v426_v28 }
 0x555   :  { %v435_v49 = vsel %vm432_vm8, %v434_v45, %v430_v44  ;;  %v534_v56 = vmul.f32 %v531_v32, %v2115_v36 }
 0x556   :  { %v438_v50 = vmul.f32 %v435_v49, %v2119_v48  ;;  %v1544_v48 = vld [vmem:[%s2482_s0 + $0xc] sm:$0xf] }
 0x5af   :  { %v537_v33 = vpop.permute.xlu1 %536 }
 0x5b0   :  { %v539_v34 = vmul.f32 %v537_v33, %v531_v32 }
 0x5b2   :  { %541 = vrot.lane.b32.xlu0 %v539_v34, %s1897_s22 }
 0x5b3   :  { %v441_v47 = vpop.permute.xlu0 %440 }
 0x5b4   :  { %v443_v35 = vmul.f32 %v441_v47, %v435_v49 }
 0x5b6   :  { %445 = vrot.lane.b32.xlu2 %v443_v35, %s1897_s22 }
 0x610   :  { %v446_v51 = vpop.permute.xlu2 %445 }
 0x611   :  { %v2154_v52 = vadd.f32 %v446_v51, %v438_v50 }
 0x613   :  { %1637 = vtanh.f32 %v2154_v52 }
 0x619   :  { %v1638_v54 = vpop.eup %1637 }
 0x61a   :  { %451 = vrot.lane.b32.xlu1 %v1638_v54, %s1896_s7 }
 0x624   :  { %v542_v57 = vpop.permute.xlu0 %541 }
 0x625   :  { %v2159_v58 = vadd.f32 %v542_v57, %v534_v56 }
 0x627   :  { %1639 = vtanh.f32 %v2159_v58 }
 0x62d   :  { %v1640_v59 = vpop.eup %1639 }
 0x62e   :  { %547 = vrot.lane.b32.xlu2 %v1640_v59, %s1896_s7 }
 0x636   :  { %650 = vperm.xlu2 %1596, %v1544_v48  }
 0x688   :  { %v548_v60 = vpop.permute.xlu2 %547 }
 0x689   :  { %v550_v61 = vmul.f32 %v548_v60, %v531_v32 }
 0x68b   :  { %552 = vrot.lane.b32.xlu0 %v550_v61, %s1897_s22 }
 0x68c   :  { %v452_v62 = vpop.permute.xlu1 %451 }
 0x68d   :  { %v2167_v63 = vmul.f32 %v452_v62, %v435_v49 }
 0x68f   :  { %555 = vrot.lane.b32.xlu1 %v2167_v63, %s1896_s7 }
 0x690   :  { %v651_v2 = vpop.permute.xlu2 %650 }
 0x691   :  { %v653_v5 = vmul.f32 %v2002_v10, %v651_v2 }
 0x6fd   :  { %v553_v36 = vpop.permute.xlu0 %552 }
 0x6fe   :  { %1545 = vmatmul.msk.f32.vlgmr.msra.gmra.mxu0 %vm156_vm5, %v553_v36 }
 0x6ff   :  { %996 = vmatpush.msra.mxu0 %v1977_v3 }
 0x701   :  { %v556_v0 = vpop.permute.xlu1 %555  ;;  %997 = vmatpush.msra.mxu0 %v1979_v4 }
 0x702   :  { %v558_v1 = vsel %vm156_vm5, %v553_v36, %v556_v0 }
 0x703   :  { %1540 = vmatmul.msk.f32.vlgmr.msrb.gmra.mxu2 %vm230_vm6, %v558_v1  ;;  %998 = vmatpush.msra.mxu0 %v1985_v6 }
 0x704   :  { %1226 = vmatpush.msrb.mxu2 %v2017_v37 }
 0x705   :  { %999 = vmatpush.msra.mxu0 %v1988_v7 }
 0x706   :  { %1227 = vmatpush.msrb.mxu2 %v2022_v38 }
 0x708   :  { %1228 = vmatpush.msrb.mxu2 %v2029_v39 }
 0x70a   :  { %1229 = vmatpush.msrb.mxu2 %v2036_v40 }
 0x70c   :  { %1230 = vmatpush.msrb.mxu2 %v2043_v41 }
 0x70e   :  { %1231 = vmatpush.msrb.mxu2 %v2050_v42 }
 0x710   :  { %1232 = vmatpush.msrb.mxu2 %v2057_v43 }
 0x712   :  { %1233 = vmatpush.msrb.mxu2 %v2067_v46 }
 0x77b   :  { %v673_v8 = vpop.f32.mrf.mxu0 }
 0x77c   :  { %v676_v11 = vadd.f32 %v673_v8, %v653_v5 }
 0x77e   :  { %v677_v12 = vadd.f32 %v2005_v13, %v676_v11 }
 0x780   :  { %1641 = vtanh.f32 %v677_v12  ;;  %v1546_v18 = vmul.f32 -1.442695, %v677_v12 }
 0x786   :  { %v1642_v14 = vpop.eup %1641  ;;  %v579_v15 = vpop.f32.mrf.mxu2 }
 0x787   :  { %v580_v16 = vadd.f32 %v2107_v55, %v579_v15  ;;  %700 = vrot.lane.b32.xlu0 %v1642_v14, %s1896_s7 }
 0x789   :  { %1643 = vtanh.f32 %v580_v16  ;;  %v1541_v19 = vmul.f32 -1.442695, %v580_v16 }
 0x78a   :  { %1645 = vpow2.f32 %v1546_v18 }
 0x78b   :  { %1647 = vpow2.f32 %v1541_v19 }
 0x78f   :  { %v1644_v17 = vpop.eup %1643 }
 0x790   :  { %604 = vrot.lane.b32.xlu1 %v1644_v17, %s1896_s7  ;;  %v1646_v20 = vpop.eup %1645 }
 0x791   :  { %v681_v21 = vadd.f32 1.0, %v1646_v20  ;;  %v1648_v22 = vpop.eup %1647 }
 0x792   :  { %v585_v23 = vadd.f32 1.0, %v1648_v22 }
 0x793   :  { %1649 = vrcp.f32 %v681_v21  ;;  %v693_v31 = vand.u32 2147483648, %v681_v21  ;;  %vm687_vm10 = vweird.f32 %v681_v21  ;;  %v691_v33 = vand.u32 2147483647, %v681_v21 }
 0x794   :  { %1651 = vrcp.f32 %v585_v23  ;;  %v597_v51 = vand.u32 2147483648, %v585_v23  ;;  %vm591_vm14 = vweird.f32 %v585_v23  ;;  %v595_v54 = vand.u32 2147483647, %v585_v23 }
 0x795   :  { %v694_v44 = vor.u32 1.1754944e-38, %v693_v31  ;;  %vm692_vm12 = vcmp.eq.f32.partialorder %v691_v33, 8.507059e+37 }
 0x796   :  { %v598_v57 = vor.u32 1.1754944e-38, %v597_v51  ;;  %vm596_vm0 = vcmp.eq.f32.partialorder %v595_v54, 8.507059e+37 }
 0x799   :  { %v1650_v24 = vpop.eup %1649 }
 0x79a   :  { %v683_v25 = vmul.f32 %v1650_v24, %v681_v21  ;;  %v1652_v27 = vpop.eup %1651  ;;  %vm688_vm9 = vweird.f32 %v1650_v24 }
 0x79b   :  { %v587_v29 = vmul.f32 %v1652_v27, %v585_v23  ;;  %vm689_vm11 = vmor %vm687_vm10, %vm688_vm9  ;;  %vm592_vm13 = vweird.f32 %v1652_v27 }
 0x79c   :  { %v684_v26 = vsub.f32 1.0, %v683_v25  ;;  %vm593_vm15 = vmor %vm591_vm14, %vm592_vm13 }
 0x79d   :  { %v588_v32 = vsub.f32 1.0, %v587_v29 }
 0x79e   :  { %v685_v28 = vmul.f32 %v1650_v24, %v684_v26 }
 0x79f   :  { %v589_v45 = vmul.f32 %v1652_v27, %v588_v32 }
 0x7a0   :  { %v686_v30 = vadd.f32 %v1650_v24, %v685_v28 }
 0x7a1   :  { %v590_v50 = vadd.f32 %v1652_v27, %v589_v45 }
 0x7a2   :  { %v690_v34 = vsel %vm689_vm11, %v1650_v24, %v686_v30 }
 0x7a3   :  { %v695_v49 = vsel %vm692_vm12, %v694_v44, %v690_v34  ;;  %v594_v56 = vsel %vm593_vm15, %v1652_v27, %v590_v50 }
 0x7a4   :  { %v599_v48 = vsel %vm596_vm0, %v598_v57, %v594_v56  ;;  %v698_v61 = vmul.f32 %v695_v49, %v2159_v58  ;;  %v1551_v58 = vld [vmem:[%s2482_s0 + $0x10] sm:$0xf] }
 0x7a5   :  { %v602_v1 = vmul.f32 %v599_v48, %v2154_v52 }
 0x7f9   :  { %v701_v47 = vpop.permute.xlu0 %700 }
 0x7fa   :  { %v703_v35 = vmul.f32 %v701_v47, %v695_v49 }
 0x7fc   :  { %705 = vrot.lane.b32.xlu2 %v703_v35, %s1897_s22 }
 0x802   :  { %v605_v59 = vpop.permute.xlu1 %604 }
 0x803   :  { %v607_v60 = vmul.f32 %v605_v59, %v599_v48 }
 0x805   :  { %609 = vrot.lane.b32.xlu0 %v607_v60, %s1897_s22 }
 0x856   :  { %v706_v62 = vpop.permute.xlu2 %705 }
 0x857   :  { %v2194_v36 = vadd.f32 %v706_v62, %v698_v61 }
 0x859   :  { %1653 = vtanh.f32 %v2194_v36 }
 0x85f   :  { %v1654_v0 = vpop.eup %1653 }
 0x860   :  { %711 = vrot.lane.b32.xlu1 %v1654_v0, %s1896_s7 }
 0x877   :  { %v610_v2 = vpop.permute.xlu0 %609 }
 0x878   :  { %v2199_v5 = vadd.f32 %v610_v2, %v602_v1 }
 0x87a   :  { %1655 = vtanh.f32 %v2199_v5 }
 0x880   :  { %v1656_v8 = vpop.eup %1655 }
 0x881   :  { %615 = vrot.lane.b32.xlu2 %v1656_v8, %s1896_s7 }
 0x889   :  { %814 = vperm.xlu2 %1596, %v1551_v58  }
 0x8d2   :  { %v712_v11 = vpop.permute.xlu1 %711 }
 0x8d3   :  { %v714_v12 = vmul.f32 %v712_v11, %v695_v49 }
 0x8d5   :  { %716 = vrot.lane.b32.xlu0 %v714_v12, %s1897_s22 }
 0x8db   :  { %v616_v14 = vpop.permute.xlu2 %615 }
 0x8dc   :  { %v2207_v15 = vmul.f32 %v616_v14, %v599_v48 }
 0x8de   :  { %719 = vrot.lane.b32.xlu1 %v2207_v15, %s1896_s7 }
 0x8e3   :  { %v815_v18 = vpop.permute.xlu2 %814 }
 0x8e4   :  { %v817_v19 = vmul.f32 %v2002_v10, %v815_v18 }
 0x947   :  { %v717_v52 = vpop.permute.xlu0 %716 }
 0x948   :  { %1552 = vmatmul.msk.f32.vlgmr.msrb.gmra.mxu0 %vm156_vm5, %v717_v52 }
 0x949   :  { %1160 = vmatpush.msrb.mxu0 %v1977_v3 }
 0x94b   :  { %1161 = vmatpush.msrb.mxu0 %v1979_v4 }
 0x94d   :  { %1162 = vmatpush.msrb.mxu0 %v1985_v6 }
 0x94f   :  { %1163 = vmatpush.msrb.mxu0 %v1988_v7 }
 0x950   :  { %v720_v16 = vpop.permute.xlu1 %719 }
 0x951   :  { %v722_v17 = vsel %vm156_vm5, %v717_v52, %v720_v16 }
 0x952   :  { %1547 = vmatmul.msk.f32.vlgmr.msrb.gmra.mxu1 %vm230_vm6, %v722_v17 }
 0x953   :  { %1390 = vmatpush.msrb.mxu1 %v2017_v37 }
 0x955   :  { %1391 = vmatpush.msrb.mxu1 %v2022_v38 }
 0x957   :  { %1392 = vmatpush.msrb.mxu1 %v2029_v39 }
 0x959   :  { %1393 = vmatpush.msrb.mxu1 %v2036_v40 }
 0x95b   :  { %1394 = vmatpush.msrb.mxu1 %v2043_v41 }
 0x95d   :  { %1395 = vmatpush.msrb.mxu1 %v2050_v42 }
 0x95f   :  { %1396 = vmatpush.msrb.mxu1 %v2057_v43 }
 0x961   :  { %1397 = vmatpush.msrb.mxu1 %v2067_v46 }
 0x9c5   :  { %v837_v20 = vpop.f32.mrf.mxu0 }
 0x9c6   :  { %v840_v21 = vadd.f32 %v837_v20, %v817_v19 }
 0x9c8   :  { %v841_v37 = vadd.f32 %v2005_v13, %v840_v21 }
 0x9ca   :  { %1657 = vtanh.f32 %v841_v37  ;;  %v1553_v42 = vmul.f32 -1.442695, %v841_v37 }
 0x9cf   :  { %v743_v38 = vpop.f32.mrf.mxu1 }
 0x9d0   :  { %v1658_v39 = vpop.eup %1657  ;;  %v744_v40 = vadd.f32 %v2107_v55, %v743_v38 }
 0x9d1   :  { %864 = vrot.lane.b32.xlu1 %v1658_v39, %s1896_s7 }
 0x9d2   :  { %1659 = vtanh.f32 %v744_v40  ;;  %v1548_v43 = vmul.f32 -1.442695, %v744_v40 }
 0x9d3   :  { %1661 = vpow2.f32 %v1553_v42 }
 0x9d4   :  { %1663 = vpow2.f32 %v1548_v43 }
 0x9d8   :  { %v1660_v41 = vpop.eup %1659 }
 0x9d9   :  { %768 = vrot.lane.b32.xlu0 %v1660_v41, %s1896_s7  ;;  %v1662_v46 = vpop.eup %1661 }
 0x9da   :  { %v845_v22 = vadd.f32 1.0, %v1662_v46  ;;  %v1664_v23 = vpop.eup %1663 }
 0x9db   :  { %v749_v24 = vadd.f32 1.0, %v1664_v23 }
 0x9dc   :  { %1665 = vrcp.f32 %v845_v22  ;;  %v857_v33 = vand.u32 2147483648, %v845_v22  ;;  %vm851_vm2 = vweird.f32 %v845_v22  ;;  %v855_v34 = vand.u32 2147483647, %v845_v22 }
 0x9dd   :  { %1667 = vrcp.f32 %v749_v24  ;;  %v761_v54 = vand.u32 2147483648, %v749_v24  ;;  %vm755_vm8 = vweird.f32 %v749_v24  ;;  %v759_v56 = vand.u32 2147483647, %v749_v24 }
 0x9de   :  { %v858_v47 = vor.u32 1.1754944e-38, %v857_v33  ;;  %vm856_vm4 = vcmp.eq.f32.partialorder %v855_v34, 8.507059e+37 }
 0x9df   :  { %v762_v59 = vor.u32 1.1754944e-38, %v761_v54  ;;  %vm760_vm10 = vcmp.eq.f32.partialorder %v759_v56, 8.507059e+37 }
 0x9e2   :  { %v1666_v25 = vpop.eup %1665 }
 0x9e3   :  { %v847_v26 = vmul.f32 %v1666_v25, %v845_v22  ;;  %v1668_v28 = vpop.eup %1667  ;;  %vm852_vm1 = vweird.f32 %v1666_v25 }
 0x9e4   :  { %v751_v30 = vmul.f32 %v1668_v28, %v749_v24  ;;  %vm853_vm3 = vmor %vm851_vm2, %vm852_vm1  ;;  %vm756_vm7 = vweird.f32 %v1668_v28 }
 0x9e5   :  { %v848_v27 = vsub.f32 1.0, %v847_v26  ;;  %vm757_vm9 = vmor %vm755_vm8, %vm756_vm7 }
 0x9e6   :  { %v752_v32 = vsub.f32 1.0, %v751_v30 }
 0x9e7   :  { %v849_v29 = vmul.f32 %v1666_v25, %v848_v27 }
 0x9e8   :  { %v753_v45 = vmul.f32 %v1668_v28, %v752_v32 }
 0x9e9   :  { %v850_v31 = vadd.f32 %v1666_v25, %v849_v29 }
 0x9ea   :  { %v754_v51 = vadd.f32 %v1668_v28, %v753_v45 }
 0x9eb   :  { %v854_v44 = vsel %vm853_vm3, %v1666_v25, %v850_v31 }
 0x9ec   :  { %v859_v35 = vsel %vm856_vm4, %v858_v47, %v854_v44  ;;  %v758_v57 = vsel %vm757_vm9, %v1668_v28, %v754_v51 }
 0x9ed   :  { %v763_v60 = vsel %vm760_vm10, %v762_v59, %v758_v57  ;;  %v862_v8 = vmul.f32 %v859_v35, %v2194_v36 }
 0x9ee   :  { %v766_v62 = vmul.f32 %v763_v60, %v2199_v5  ;;  %v1558_v5 = vld [vmem:[%s2482_s0 + $0x14] sm:$0xf] }
 0xa43   :  { %v865_v49 = vpop.permute.xlu1 %864 }
 0xa44   :  { %v867_v50 = vmul.f32 %v865_v49, %v859_v35 }
 0xa46   :  { %869 = vrot.lane.b32.xlu0 %v867_v50, %s1897_s22 }
 0xa4b   :  { %v769_v48 = vpop.permute.xlu0 %768 }
 0xa4c   :  { %v771_v61 = vmul.f32 %v769_v48, %v763_v60 }
 0xa4e   :  { %773 = vrot.lane.b32.xlu2 %v771_v61, %s1897_s22 }
 0xaa8   :  { %v774_v0 = vpop.permute.xlu2 %773 }
 0xaa9   :  { %v2234_v1 = vadd.f32 %v774_v0, %v766_v62 }
 0xaab   :  { %1669 = vtanh.f32 %v2234_v1 }
 0xab1   :  { %v1670_v2 = vpop.eup %1669 }
 0xab2   :  { %779 = vrot.lane.b32.xlu1 %v1670_v2, %s1896_s7 }
 0xab8   :  { %v870_v58 = vpop.permute.xlu0 %869 }
 0xab9   :  { %v2239_v11 = vadd.f32 %v870_v58, %v862_v8  ;;  %v1565_v58 = vld [vmem:[%s2482_s0 + $0x18] sm:$0xf] }
 0xabb   :  { %1671 = vtanh.f32 %v2239_v11 }
 0xac1   :  { %v1672_v12 = vpop.eup %1671 }
 0xac2   :  { %875 = vrot.lane.b32.xlu2 %v1672_v12, %s1896_s7 }
 0xaca   :  { %978 = vperm.xlu2 %1596, %v1558_v5  }
 0xb1c   :  { %v876_v14 = vpop.permute.xlu2 %875 }
 0xb1d   :  { %v878_v52 = vmul.f32 %v876_v14, %v859_v35 }
 0xb1f   :  { %880 = vrot.lane.b32.xlu0 %v878_v52, %s1897_s22 }
 0xb24   :  { %v780_v16 = vpop.permute.xlu1 %779  ;;  %v979_v20 = vpop.permute.xlu2 %978 }
 0xb25   :  { %v2247_v17 = vmul.f32 %v780_v16, %v763_v60  ;;  %v981_v21 = vmul.f32 %v2002_v10, %v979_v20 }
 0xb27   :  { %883 = vrot.lane.b32.xlu1 %v2247_v17, %s1896_s7 }
 0xb91   :  { %v881_v36 = vpop.permute.xlu0 %880 }
 0xb92   :  { %1559 = vmatmul.msk.f32.vlgmr.msra.gmra.mxu0 %vm156_vm5, %v881_v36 }
 0xb93   :  { %1324 = vmatpush.msra.mxu0 %v1977_v3 }
 0xb95   :  { %1325 = vmatpush.msra.mxu0 %v1979_v4 }
 0xb97   :  { %1326 = vmatpush.msra.mxu0 %v1985_v6 }
 0xb99   :  { %v884_v18 = vpop.permute.xlu1 %883  ;;  %1327 = vmatpush.msra.mxu0 %v1988_v7 }
 0xb9a   :  { %v886_v19 = vsel %vm156_vm5, %v881_v36, %v884_v18  ;;  %v2286_v18 = vld [vmem:[#allocation5] ss:$0 sm:$0xff] }
 0xb9b   :  { %1554 = vmatmul.msk.f32.vlgmr.msra.gmra.mxu2 %vm230_vm6, %v886_v19 }
 0xc0f   :  { %v1001_v37 = vpop.f32.mrf.mxu0 }
 0xc10   :  { %v1004_v38 = vadd.f32 %v1001_v37, %v981_v21  ;;  %v2289_v37 = vld [vmem:[#allocation8] ss:$0 sm:$0xff] }
 0xc12   :  { %v1005_v39 = vadd.f32 %v2005_v13, %v1004_v38 }
 0xc14   :  { %1673 = vtanh.f32 %v1005_v39  ;;  %v1560_v40 = vmul.f32 -1.442695, %v1005_v39 }
 0xc1a   :  { %v1674_v3 = vpop.eup %1673 }
 0xc1b   :  { %1028 = vrot.lane.b32.xlu0 %v1674_v3, %s1896_s7 }
 0xc1e   :  { %v907_v4 = vpop.f32.mrf.mxu2 }
 0xc1f   :  { %v908_v6 = vadd.f32 %v2107_v55, %v907_v4 }
 0xc21   :  { %1675 = vtanh.f32 %v908_v6  ;;  %v1555_v10 = vmul.f32 -1.442695, %v908_v6 }
 0xc22   :  { %1677 = vpow2.f32 %v1560_v40 }
 0xc27   :  { %v1676_v7 = vpop.eup %1675 }
 0xc28   :  { %932 = vrot.lane.b32.xlu1 %v1676_v7, %s1896_s7  ;;  %v1678_v41 = vpop.eup %1677 }
 0xc29   :  { %v1009_v42 = vadd.f32 1.0, %v1678_v41 }
 0xc2b   :  { %1679 = vrcp.f32 %v1009_v42  ;;  %v1021_v27 = vand.u32 2147483648, %v1009_v42  ;;  %vm1015_vm12 = vweird.f32 %v1009_v42  ;;  %v1019_v29 = vand.u32 2147483647, %v1009_v42 }
 0xc2c   :  { %1681 = vpow2.f32 %v1555_v10 }
 0xc2d   :  { %v1022_v31 = vor.u32 1.1754944e-38, %v1021_v27  ;;  %vm1020_vm14 = vcmp.eq.f32.partialorder %v1019_v29, 8.507059e+37 }
 0xc31   :  { %v1680_v43 = vpop.eup %1679 }
 0xc32   :  { %v1682_v13 = vpop.eup %1681  ;;  %v1011_v22 = vmul.f32 %v1680_v43, %v1009_v42  ;;  %vm1016_vm11 = vweird.f32 %v1680_v43 }
 0xc33   :  { %v913_v46 = vadd.f32 1.0, %v1682_v13  ;;  %vm1017_vm13 = vmor %vm1015_vm12, %vm1016_vm11 }
 0xc34   :  { %v1012_v23 = vsub.f32 1.0, %v1011_v22 }
 0xc35   :  { %1683 = vrcp.f32 %v913_v46  ;;  %v925_v49 = vand.u32 2147483648, %v913_v46  ;;  %vm919_vm0 = vweird.f32 %v913_v46  ;;  %v923_v35 = vand.u32 2147483647, %v913_v46 }
 0xc36   :  { %v1013_v24 = vmul.f32 %v1680_v43, %v1012_v23 }
 0xc37   :  { %v926_v51 = vor.u32 1.1754944e-38, %v925_v49  ;;  %vm924_vm2 = vcmp.eq.f32.partialorder %v923_v35, 8.507059e+37 }
 0xc38   :  { %v1014_v26 = vadd.f32 %v1680_v43, %v1013_v24 }
 0xc3a   :  { %v1018_v30 = vsel %vm1017_vm13, %v1680_v43, %v1014_v26 }
 0xc3b   :  { %v1684_v25 = vpop.eup %1683  ;;  %v1023_v34 = vsel %vm1020_vm14, %v1022_v31, %v1018_v30 }
 0xc3c   :  { %v915_v28 = vmul.f32 %v1684_v25, %v913_v46  ;;  %vm920_vm15 = vweird.f32 %v1684_v25  ;;  %v1026_v59 = vmul.f32 %v1023_v34, %v2239_v11 }
 0xc3d   :  { %vm921_vm1 = vmor %vm919_vm0, %vm920_vm15 }
 0xc3e   :  { %v916_v32 = vsub.f32 1.0, %v915_v28 }
 0xc40   :  { %v917_v45 = vmul.f32 %v1684_v25, %v916_v32 }
 0xc42   :  { %v918_v47 = vadd.f32 %v1684_v25, %v917_v45 }
 0xc44   :  { %v922_v50 = vsel %vm921_vm1, %v1684_v25, %v918_v47 }
 0xc45   :  { %v927_v56 = vsel %vm924_vm2, %v926_v51, %v922_v50 }
 0xc46   :  { %v930_v62 = vmul.f32 %v927_v56, %v2234_v1 }
 0xc8d   :  { %v1029_v33 = vpop.permute.xlu0 %1028 }
 0xc8e   :  { %v1031_v44 = vmul.f32 %v1029_v33, %v1023_v34 }
 0xc90   :  { %1033 = vrot.lane.b32.xlu2 %v1031_v44, %s1897_s22 }
 0xc9a   :  { %v933_v54 = vpop.permute.xlu1 %932 }
 0xc9b   :  { %v935_v57 = vmul.f32 %v933_v54, %v927_v56 }
 0xc9d   :  { %937 = vrot.lane.b32.xlu0 %v935_v57, %s1897_s22 }
 0xcea   :  { %v1034_v48 = vpop.permute.xlu2 %1033 }
 0xceb   :  { %v2266_v60 = vadd.f32 %v1034_v48, %v1026_v59 }
 0xced   :  { %1685 = vtanh.f32 %v2266_v60 }
 0xcf3   :  { %v1686_v61 = vpop.eup %1685 }
 0xcf4   :  { %1039 = vrot.lane.b32.xlu1 %v1686_v61, %s1896_s7 }
 0xd0f   :  { %v938_v0 = vpop.permute.xlu0 %937 }
 0xd10   :  { %v2271_v2 = vadd.f32 %v938_v0, %v930_v62 }
 0xd12   :  { %1687 = vtanh.f32 %v2271_v2 }
 0xd18   :  { %v1688_v8 = vpop.eup %1687 }
 0xd19   :  { %943 = vrot.lane.b32.xlu2 %v1688_v8, %s1896_s7 }
 0xd21   :  { %1142 = vperm.xlu2 %1596, %v1565_v58  }
 0xd66   :  { %v1040_v11 = vpop.permute.xlu1 %1039 }
 0xd67   :  { %v1042_v12 = vmul.f32 %v1040_v11, %v1023_v34 }
 0xd69   :  { %1044 = vrot.lane.b32.xlu0 %v1042_v12, %s1897_s22 }
 0xd73   :  { %v944_v5 = vpop.permute.xlu2 %943 }
 0xd74   :  { %v2279_v14 = vmul.f32 %v944_v5, %v927_v56 }
 0xd76   :  { %1047 = vrot.lane.b32.xlu1 %v2279_v14, %s1896_s7 }
 0xd7b   :  { %v1143_v36 = vpop.permute.xlu2 %1142 }
 0xd7c   :  { %v1145_v19 = vmul.f32 %v2286_v18, %v1143_v36 }
 0xddb   :  { %v1045_v1 = vpop.permute.xlu0 %1044 }
 0xddc   :  { %1566 = vmatmul.msk.f32.vlgmr.msrb.gmra.mxu0 %vm156_vm5, %v1045_v1 }
 0xde8   :  { %v1048_v52 = vpop.permute.xlu1 %1047 }
 0xde9   :  { %v1050_v16 = vsel %vm156_vm5, %v1045_v1, %v1048_v52 }
 0xdea   :  { %1561 = vmatmul.msk.f32.vlgmr.msra.gmra.mxu1 %vm230_vm6, %v1050_v16 }
 0xe59   :  { %v1165_v20 = vpop.f32.mrf.mxu0 }
 0xe5a   :  { %v1168_v21 = vadd.f32 %v1165_v20, %v1145_v19 }
 0xe5c   :  { %v1169_v38 = vadd.f32 %v2289_v37, %v1168_v21 }
 0xe5e   :  { %1689 = vtanh.f32 %v1169_v38  ;;  %v1567_v7 = vmul.f32 -1.442695, %v1169_v38 }
 0xe64   :  { %v1690_v39 = vpop.eup %1689 }
 0xe65   :  { %1192 = vrot.lane.b32.xlu1 %v1690_v39, %s1896_s7 }
 0xe67   :  { %v1071_v3 = vpop.f32.mrf.mxu1 }
 0xe68   :  { %v1072_v4 = vadd.f32 %v2107_v55, %v1071_v3  ;;  %v2321_v3 = vld [vmem:[#allocation8 + $0x1] ss:$0 sm:$0xff] }
 0xe6a   :  { %1691 = vtanh.f32 %v1072_v4  ;;  %v1562_v41 = vmul.f32 -1.442695, %v1072_v4 }
 0xe6b   :  { %1693 = vpow2.f32 %v1567_v7 }
 0xe6c   :  { %1695 = vpow2.f32 %v1562_v41 }
 0xe70   :  { %v1692_v6 = vpop.eup %1691 }
 0xe71   :  { %1096 = vrot.lane.b32.xlu0 %v1692_v6, %s1896_s7  ;;  %v1694_v40 = vpop.eup %1693 }
 0xe72   :  { %v1173_v42 = vadd.f32 1.0, %v1694_v40  ;;  %v1696_v10 = vpop.eup %1695 }
 0xe73   :  { %v1077_v13 = vadd.f32 1.0, %v1696_v10 }
 0xe74   :  { %1697 = vrcp.f32 %v1173_v42  ;;  %v1185_v26 = vand.u32 2147483648, %v1173_v42  ;;  %vm1179_vm4 = vweird.f32 %v1173_v42  ;;  %v1183_v27 = vand.u32 2147483647, %v1173_v42 }
 0xe75   :  { %1699 = vrcp.f32 %v1077_v13  ;;  %v1089_v45 = vand.u32 2147483648, %v1077_v13  ;;  %vm1083_vm10 = vweird.f32 %v1077_v13  ;;  %v1087_v47 = vand.u32 2147483647, %v1077_v13 }
 0xe76   :  { %v1186_v30 = vor.u32 1.1754944e-38, %v1185_v26  ;;  %vm1184_vm8 = vcmp.eq.f32.partialorder %v1183_v27, 8.507059e+37 }
 0xe77   :  { %v1090_v35 = vor.u32 1.1754944e-38, %v1089_v45  ;;  %vm1088_vm12 = vcmp.eq.f32.partialorder %v1087_v47, 8.507059e+37 }
 0xe7a   :  { %v1698_v43 = vpop.eup %1697 }
 0xe7b   :  { %v1175_v46 = vmul.f32 %v1698_v43, %v1173_v42  ;;  %v1700_v24 = vpop.eup %1699  ;;  %vm1180_vm3 = vweird.f32 %v1698_v43 }
 0xe7c   :  { %v1079_v25 = vmul.f32 %v1700_v24, %v1077_v13  ;;  %vm1181_vm7 = vmor %vm1179_vm4, %vm1180_vm3  ;;  %vm1084_vm9 = vweird.f32 %v1700_v24 }
 0xe7d   :  { %v1176_v22 = vsub.f32 1.0, %v1175_v46  ;;  %vm1085_vm11 = vmor %vm1083_vm10, %vm1084_vm9 }
 0xe7e   :  { %v1080_v29 = vsub.f32 1.0, %v1079_v25 }
 0xe7f   :  { %v1177_v23 = vmul.f32 %v1698_v43, %v1176_v22 }
 0xe80   :  { %v1081_v34 = vmul.f32 %v1700_v24, %v1080_v29 }
 0xe81   :  { %v1178_v55 = vadd.f32 %v1698_v43, %v1177_v23 }
 0xe82   :  { %v1082_v44 = vadd.f32 %v1700_v24, %v1081_v34 }
 0xe83   :  { %v1182_v28 = vsel %vm1181_vm7, %v1698_v43, %v1178_v55  ;;  %vm1466_vm7 = vcmask 257024  }
 0xe84   :  { %v1187_v31 = vsel %vm1184_vm8, %v1186_v30, %v1182_v28  ;;  %v1086_v49 = vsel %vm1085_vm11, %v1700_v24, %v1082_v44 }
 0xe85   :  { %v1091_v51 = vsel %vm1088_vm12, %v1090_v35, %v1086_v49  ;;  %v1190_v61 = vmul.f32 %v1187_v31, %v2266_v60 }
 0xe86   :  { %v1094_v56 = vmul.f32 %v1091_v51, %v2271_v2  ;;  %v1572_v2 = vld [vmem:[%s2482_s0 + $0x1c] sm:$0xf]  ;;  %s1898_s0 = smov 96  }
 0xed7   :  { %v1193_v32 = vpop.permute.xlu1 %1192 }
 0xed8   :  { %v1195_v33 = vmul.f32 %v1193_v32, %v1187_v31 }
 0xeda   :  { %1197 = vrot.lane.b32.xlu0 %v1195_v33, %s1897_s22 }
 0xee3   :  { %v1097_v50 = vpop.permute.xlu0 %1096 }
 0xee4   :  { %v1099_v54 = vmul.f32 %v1097_v50, %v1091_v51 }
 0xee6   :  { %1101 = vrot.lane.b32.xlu2 %v1099_v54, %s1897_s22 }
 0xf40   :  { %v1102_v57 = vpop.permute.xlu2 %1101 }
 0xf41   :  { %v2298_v59 = vadd.f32 %v1102_v57, %v1094_v56 }
 0xf43   :  { %1701 = vtanh.f32 %v2298_v59 }
 0xf49   :  { %v1702_v48 = vpop.eup %1701 }
 0xf4a   :  { %1107 = vrot.lane.b32.xlu1 %v1702_v48, %s1896_s7 }
 0xf4c   :  { %v1198_v62 = vpop.permute.xlu0 %1197 }
 0xf4d   :  { %v2303_v0 = vadd.f32 %v1198_v62, %v1190_v61 }
 0xf4f   :  { %1703 = vtanh.f32 %v2303_v0 }
 0xf55   :  { %v1704_v8 = vpop.eup %1703 }
 0xf56   :  { %1203 = vrot.lane.b32.xlu2 %v1704_v8, %s1896_s7 }
 0xf5e   :  { %1306 = vperm.xlu2 %1596, %v1572_v2  }
 0xfb0   :  { %v1204_v58 = vpop.permute.xlu2 %1203 }
 0xfb1   :  { %v1206_v11 = vmul.f32 %v1204_v58, %v1187_v31 }
 0xfb3   :  { %1208 = vrot.lane.b32.xlu0 %v1206_v11, %s1897_s22 }
 0xfb8   :  { %v1307_v16 = vpop.permute.xlu2 %1306 }
 0xfb9   :  { %v1309_v36 = vmul.f32 %v2286_v18, %v1307_v16 }
 0xfbc   :  { %v1108_v12 = vpop.permute.xlu1 %1107 }
 0xfbd   :  { %v2311_v5 = vmul.f32 %v1108_v12, %v1091_v51  ;;  %v2363_v12 = vld [vmem:[%s2488_s6] sm:$0xff] }
 0xfbf   :  { %1211 = vrot.lane.b32.xlu1 %v2311_v5, %s1896_s7 }
0x1025   :  { %v1209_v60 = vpop.permute.xlu0 %1208 }
0x1026   :  { %1573 = vmatmul.msk.f32.vlgmr.msra.gmra.mxu0 %vm156_vm5, %v1209_v60 }
0x1031   :  { %v1212_v1 = vpop.permute.xlu1 %1211 }
0x1032   :  { %v1214_v52 = vsel %vm156_vm5, %v1209_v60, %v1212_v1 }
0x1033   :  { %1568 = vmatmul.msk.f32.vlgmr.msrb.gmra.mxu2 %vm230_vm6, %v1214_v52 }
0x10a3   :  { %v1329_v19 = vpop.f32.mrf.mxu0 }
0x10a4   :  { %v1332_v20 = vadd.f32 %v1329_v19, %v1309_v36 }
0x10a6   :  { %v1333_v21 = vadd.f32 %v2289_v37, %v1332_v20 }
0x10a8   :  { %1705 = vtanh.f32 %v1333_v21  ;;  %v1574_v7 = vmul.f32 -1.442695, %v1333_v21 }
0x10ae   :  { %v1706_v38 = vpop.eup %1705 }
0x10af   :  { %1356 = vrot.lane.b32.xlu1 %v1706_v38, %s1896_s7  ;;  %v1597_v38 = vld [vmem:[%s2490_s8] ss:$0 sm:$0xff] }
0x10b6   :  { %v1235_v39 = vpop.f32.mrf.mxu2 }
0x10b7   :  { %v1236_v4 = vadd.f32 %v2321_v3, %v1235_v39 }
0x10b9   :  { %1707 = vtanh.f32 %v1236_v4  ;;  %v1569_v41 = vmul.f32 -1.442695, %v1236_v4  ;;  %v2388_v4 = vadd.f32 %v1597_v38, %v2000_v9 }
0x10ba   :  { %1709 = vpow2.f32 %v1574_v7 }
0x10bf   :  { %v1708_v6 = vpop.eup %1707 }
0x10c0   :  { %1260 = vrot.lane.b32.xlu0 %v1708_v6, %s1896_s7  ;;  %v1710_v18 = vpop.eup %1709 }
0x10c1   :  { %v1337_v40 = vadd.f32 1.0, %v1710_v18 }
0x10c3   :  { %1711 = vrcp.f32 %v1337_v40  ;;  %v1349_v23 = vand.u32 2147483648, %v1337_v40  ;;  %vm1343_vm14 = vweird.f32 %v1337_v40  ;;  %v1347_v55 = vand.u32 2147483647, %v1337_v40 }
0x10c4   :  { %1713 = vpow2.f32 %v1569_v41 }
0x10c5   :  { %v1350_v26 = vor.u32 1.1754944e-38, %v1349_v23  ;;  %vm1348_vm0 = vcmp.eq.f32.partialorder %v1347_v55, 8.507059e+37 }
0x10c9   :  { %v1712_v37 = vpop.eup %1711 }
0x10ca   :  { %v1339_v42 = vmul.f32 %v1712_v37, %v1337_v40  ;;  %v1714_v10 = vpop.eup %1713  ;;  %vm1344_vm13 = vweird.f32 %v1712_v37 }
0x10cb   :  { %v1241_v43 = vadd.f32 1.0, %v1714_v10  ;;  %vm1345_vm15 = vmor %vm1343_vm14, %vm1344_vm13 }
0x10cc   :  { %v1340_v13 = vsub.f32 1.0, %v1339_v42 }
0x10cd   :  { %1715 = vrcp.f32 %v1241_v43  ;;  %v1253_v34 = vand.u32 2147483648, %v1241_v43  ;;  %vm1247_vm2 = vweird.f32 %v1241_v43  ;;  %v1251_v44 = vand.u32 2147483647, %v1241_v43 }
0x10ce   :  { %v1341_v46 = vmul.f32 %v1712_v37, %v1340_v13 }
0x10cf   :  { %v1254_v47 = vor.u32 1.1754944e-38, %v1253_v34  ;;  %vm1252_vm4 = vcmp.eq.f32.partialorder %v1251_v44, 8.507059e+37 }
0x10d0   :  { %v1342_v22 = vadd.f32 %v1712_v37, %v1341_v46 }
0x10d2   :  { %v1346_v25 = vsel %vm1345_vm15, %v1712_v37, %v1342_v22 }
0x10d3   :  { %v1716_v24 = vpop.eup %1715  ;;  %v1351_v28 = vsel %vm1348_vm0, %v1350_v26, %v1346_v25 }
0x10d4   :  { %v1243_v27 = vmul.f32 %v1716_v24, %v1241_v43  ;;  %vm1248_vm1 = vweird.f32 %v1716_v24  ;;  %v1354_v57 = vmul.f32 %v1351_v28, %v2303_v0  ;;  %v2346_v0 = vld [vmem:[%s2488_s6 + $0x18] sm:$0xff] }
0x10d5   :  { %vm1249_vm3 = vmor %vm1247_vm2, %vm1248_vm1  ;;  %308 = vmatpush.msra.mxu3 %v2346_v0 }
0x10d6   :  { %v1244_v31 = vsub.f32 1.0, %v1243_v27 }
0x10d8   :  { %v1245_v32 = vmul.f32 %v1716_v24, %v1244_v31 }
0x10da   :  { %v1246_v33 = vadd.f32 %v1716_v24, %v1245_v32 }
0x10dc   :  { %v1250_v45 = vsel %vm1249_vm3, %v1716_v24, %v1246_v33 }
0x10dd   :  { %v1255_v35 = vsel %vm1252_vm4, %v1254_v47, %v1250_v45 }
0x10de   :  { %v1258_v51 = vmul.f32 %v1255_v35, %v2298_v59 }
0x1121   :  { %v1357_v29 = vpop.permute.xlu1 %1356 }
0x1122   :  { %v1359_v30 = vmul.f32 %v1357_v29, %v1351_v28 }
0x1124   :  { %1361 = vrot.lane.b32.xlu0 %v1359_v30, %s1897_s22 }
0x1132   :  { %v1261_v49 = vpop.permute.xlu0 %1260 }
0x1133   :  { %v1263_v50 = vmul.f32 %v1261_v49, %v1255_v35 }
0x1135   :  { %1265 = vrot.lane.b32.xlu2 %v1263_v50, %s1897_s22 }
0x118f   :  { %v1266_v54 = vpop.permute.xlu2 %1265 }
0x1190   :  { %v2328_v56 = vadd.f32 %v1266_v54, %v1258_v51 }
0x1192   :  { %1717 = vtanh.f32 %v2328_v56 }
0x1196   :  { %v1362_v48 = vpop.permute.xlu0 %1361 }
0x1197   :  { %v1364_v61 = vadd.f32 %v1362_v48, %v1354_v57 }
0x1198   :  { %v1718_v62 = vpop.eup %1717 }
0x1199   :  { %1719 = vtanh.f32 %v1364_v61  ;;  %1271 = vrot.lane.b32.xlu1 %v1718_v62, %s1896_s7 }
0x119f   :  { %v1720_v8 = vpop.eup %1719 }
0x11a0   :  { %1367 = vrot.lane.b32.xlu2 %v1720_v8, %s1896_s7 }
0x11fa   :  { %v1368_v2 = vpop.permute.xlu2 %1367 }
0x11fb   :  { %v1370_v58 = vmul.f32 %v1368_v2, %v1351_v28 }
0x11fd   :  { %1372 = vrot.lane.b32.xlu0 %v1370_v58, %s1897_s22 }
0x120b   :  { %v1272_v59 = vpop.permute.xlu1 %1271 }
0x120c   :  { %v1274_v11 = vmul.f32 %v1272_v59, %v1255_v35 }
0x120e   :  { %1375 = vrot.lane.b32.xlu1 %v1274_v11, %s1896_s7 }
0x1216   :  { %292 = vrot.lane.b32.xlu1 %v2127_v53, %s1897_s22  ;;  %v2352_v53 = vld [vmem:[%s2488_s6 + $0x10] sm:$0xff] }
0x1217   :  { %309 = vmatpush.msra.mxu3 %v2352_v53 }
0x121e   :  { %620 = vrot.lane.b32.xlu1 %v2207_v15, %s1897_s22  ;;  %v2357_v15 = vld [vmem:[%s2488_s6 + $0x8] sm:$0xff] }
0x121f   :  { %310 = vmatpush.msra.mxu3 %v2357_v15 }
0x1221   :  { %311 = vmatpush.msra.mxu3 %v2363_v12 }
0x1223   :  { %472 = vmatpush.msrb.mxu3 %v2346_v0 }
0x1225   :  { %473 = vmatpush.msrb.mxu3 %v2352_v53 }
0x1226   :  { %1112 = vrot.lane.b32.xlu1 %v2311_v5, %s1897_s22 }
0x1227   :  { %474 = vmatpush.msrb.mxu3 %v2357_v15 }
0x1229   :  { %475 = vmatpush.msrb.mxu3 %v2363_v12 }
0x122e   :  { %1469 = vrot.lane.b32.xlu1 %v1364_v61, %s1898_s0 }
0x126f   :  { %v1373_v5 = vpop.permute.xlu0 %1372 }
0x1270   :  { %1467 = vst.msk [vmem:[#allocation10] sm:$0xf] %vm1466_vm7, %v1373_v5 }
0x1280   :  { %v1376_v60 = vpop.permute.xlu1 %1375 }
0x1281   :  { %v1378_v1 = vsel %vm156_vm5, %v1373_v5, %v1376_v60 }
0x1282   :  { %1575 = vmatmul.msk.f32.vlgmr.msrb.gmra.mxu1 %vm230_vm6, %v1378_v1  ;;  %vm316_vm6 = vcmask 44032  }
0x1288   :  { %v293_v52 = vpop.permute.xlu1 %292 }
0x1289   :  { %1529 = vmatmul.msk.f32.vlgmr.msra.gmra.mxu3 %vm156_vm5, %v293_v52 }
0x128a   :  { %636 = vmatpush.msra.mxu3 %v2346_v0 }
0x128c   :  { %637 = vmatpush.msra.mxu3 %v2352_v53 }
0x128e   :  { %638 = vmatpush.msra.mxu3 %v2357_v15 }
0x1290   :  { %v621_v16 = vpop.permute.xlu1 %620  ;;  %639 = vmatpush.msra.mxu3 %v2363_v12 }
0x1298   :  { %v2379_v36 = vpop.permute.xlu1 %1112 }
0x12a0   :  { %v1470_v19 = vpop.permute.xlu1 %1469 }
0x12a1   :  { %1472 = vst.msk [vmem:[#allocation11] sm:$0xf] %vm1466_vm7, %v1470_v19 }
0x12ff   :  { %v1399_v20 = vpop.f32.mrf.mxu1 }
0x1300   :  { %v1400_v21 = vadd.f32 %v2321_v3, %v1399_v20 }
0x1302   :  { %1721 = vtanh.f32 %v1400_v21  ;;  %v1576_v3 = vmul.f32 -1.442695, %v1400_v21 }
0x1304   :  { %1723 = vpow2.f32 %v1576_v3 }
0x1308   :  { %v1722_v39 = vpop.eup %1721 }
0x1309   :  { %1424 = vrot.lane.b32.xlu2 %v1722_v39, %s1896_s7 }
0x130a   :  { %v1724_v9 = vpop.eup %1723 }
0x130b   :  { %v1405_v18 = vadd.f32 1.0, %v1724_v9 }
0x130c   :  { %v313_v6 = vpop.f32.mrf.mxu3 }
0x130d   :  { %v314_v7 = vadd.f32 %v313_v6, %v2388_v4  ;;  %1725 = vrcp.f32 %v1405_v18  ;;  %v1417_v43 = vand.u32 2147483648, %v1405_v18  ;;  %vm1411_vm9 = vweird.f32 %v1405_v18 }
0x130e   :  { %v1415_v13 = vand.u32 2147483647, %v1405_v18 }
0x130f   :  { %317 = vst.msk [vmem:[%s2491_s9] sm:$0xf] %vm316_vm6, %v314_v7  ;;  %v1418_v46 = vor.u32 1.1754944e-38, %v1417_v43 }
0x1310   :  { %vm1416_vm11 = vcmp.eq.f32.partialorder %v1415_v13, 8.507059e+37 }
0x1311   :  { %456 = vrot.lane.b32.xlu2 %v2167_v63, %s1897_s22 }
0x1313   :  { %v1726_v40 = vpop.eup %1725 }
0x1314   :  { %v1407_v41 = vmul.f32 %v1726_v40, %v1405_v18  ;;  %vm1412_vm8 = vweird.f32 %v1726_v40 }
0x1315   :  { %vm1413_vm10 = vmor %vm1411_vm9, %vm1412_vm8 }
0x1316   :  { %v1408_v37 = vsub.f32 1.0, %v1407_v41 }
0x1318   :  { %v1409_v42 = vmul.f32 %v1726_v40, %v1408_v37 }
0x1319   :  { %784 = vrot.lane.b32.xlu2 %v2247_v17, %s1897_s22 }
0x131a   :  { %v1410_v10 = vadd.f32 %v1726_v40, %v1409_v42 }
0x131c   :  { %v1414_v63 = vsel %vm1413_vm10, %v1726_v40, %v1410_v10 }
0x131d   :  { %v1419_v22 = vsel %vm1416_vm11, %v1418_v46, %v1414_v63 }
0x131e   :  { %v1422_v25 = vmul.f32 %v1419_v22, %v2328_v56 }
0x1321   :  { %1276 = vrot.lane.b32.xlu2 %v1274_v11, %s1897_s22 }
0x1363   :  { %v1425_v17 = vpop.permute.xlu2 %1424 }
0x1364   :  { %v1427_v23 = vmul.f32 %v1425_v17, %v1419_v22 }
0x1366   :  { %1429 = vrot.lane.b32.xlu0 %v1427_v23, %s1897_s22 }
0x136b   :  { %v457_v24 = vpop.permute.xlu2 %456 }
0x136c   :  { %1535 = vmatmul.msk.f32.vlgmr.msrb.gmra.mxu3 %vm156_vm5, %v457_v24 }
0x136d   :  { %800 = vmatpush.msrb.mxu3 %v2346_v0 }
0x136f   :  { %801 = vmatpush.msrb.mxu3 %v2352_v53 }
0x1371   :  { %802 = vmatpush.msrb.mxu3 %v2357_v15 }
0x1373   :  { %803 = vmatpush.msrb.mxu3 %v2363_v12  ;;  %v785_v55 = vpop.permute.xlu2 %784 }
0x1374   :  { %1542 = vmatmul.msk.f32.vlgmr.msra.gmra.mxu3 %vm156_vm5, %v621_v16 }
0x1375   :  { %964 = vmatpush.msra.mxu3 %v2346_v0 }
0x1377   :  { %965 = vmatpush.msra.mxu3 %v2352_v53 }
0x1379   :  { %966 = vmatpush.msra.mxu3 %v2357_v15 }
0x137b   :  { %967 = vmatpush.msra.mxu3 %v2363_v12 }
0x137c   :  { %1549 = vmatmul.msk.f32.vlgmr.msrb.gmra.mxu3 %vm156_vm5, %v785_v55 }
0x137d   :  { %1128 = vmatpush.msrb.mxu3 %v2346_v0 }
0x137f   :  { %1129 = vmatpush.msrb.mxu3 %v2352_v53 }
0x1381   :  { %1130 = vmatpush.msrb.mxu3 %v2357_v15 }
0x1383   :  { %1131 = vmatpush.msrb.mxu3 %v2363_v12 }
0x13d8   :  { %v1430_v26 = vpop.permute.xlu0 %1429 }
0x13d9   :  { %v1432_v27 = vadd.f32 %v1430_v26, %v1422_v25 }
0x13db   :  { %1727 = vtanh.f32 %v1432_v27  ;;  %1477 = vrot.lane.b32.xlu2 %v1432_v27, %s1898_s0 }
0x13e1   :  { %v1728_v28 = vpop.eup %1727 }
0x13e2   :  { %1435 = vrot.lane.b32.xlu0 %v1728_v28, %s1896_s7 }
0x13ea   :  { %948 = vrot.lane.b32.xlu0 %v2279_v14, %s1897_s22  ;;  %v1277_v14 = vpop.permute.xlu2 %1276 }
0x13ef   :  { %v477_v29 = vpop.f32.mrf.mxu3 }
0x13f0   :  { %v478_v30 = vadd.f32 %v477_v29, %v2388_v4 }
0x13f2   :  { %1536 = vst.msk [vmem:[%s2491_s9 + $0x4] sm:$0xf] %vm316_vm6, %v478_v30 }
0x13f7   :  { %v641_v31 = vpop.f32.mrf.mxu3 }
0x13f8   :  { %v642_v32 = vadd.f32 %v641_v31, %v2388_v4 }
0x13fa   :  { %1543 = vst.msk [vmem:[%s2491_s9 + $0x8] sm:$0xf] %vm316_vm6, %v642_v32 }
0x13ff   :  { %v805_v33 = vpop.f32.mrf.mxu3 }
0x1400   :  { %v806_v34 = vadd.f32 %v805_v33, %v2388_v4 }
0x1402   :  { %1550 = vst.msk [vmem:[%s2491_s9 + $0xc] sm:$0xf] %vm316_vm6, %v806_v34 }
0x1435   :  { %v1478_v44 = vpop.permute.xlu2 %1477 }
0x1436   :  { %1481 = vst.msk [vmem:[#allocation11 + $0x4] sm:$0xf] %vm1466_vm7, %v1478_v44 }
0x1437   :  { %1509 = dma.vmem_to_hbm [thread:$0]  %s1502_s28, 128, %s1504_s30, [#allocation12], %s1896_s7, %s1896_s7, %s1901_s29  }
0x1454   :  { %v1436_v45 = vpop.permute.xlu0 %1435 }
0x1455   :  { %v1438_v47 = vmul.f32 %v1436_v45, %v1419_v22 }
0x1457   :  { %1440 = vrot.lane.b32.xlu0 %v1438_v47, %s1897_s22  ;;  %s1899_s22 = smov [#allocation10]  }
0x1458   :  { %s1488_s23 = sshll.u32 %s1899_s22, 4  ;;  %s1489_s23 = int_to_ptr.vmem [resolvable:$true] %s1488_s23 }
0x145c   :  { %v949_v49 = vpop.permute.xlu0 %948 }
0x145d   :  { %1556 = vmatmul.msk.f32.vlgmr.msra.gmra.mxu3 %vm156_vm5, %v949_v49 }
0x145e   :  { %1292 = vmatpush.msra.mxu3 %v2346_v0 }
0x1460   :  { %1293 = vmatpush.msra.mxu3 %v2352_v53 }
0x1462   :  { %1294 = vmatpush.msra.mxu3 %v2357_v15 }
0x1464   :  { %1295 = vmatpush.msra.mxu3 %v2363_v12 }
0x1465   :  { %1563 = vmatmul.msk.f32.vlgmr.msrb.gmra.mxu3 %vm156_vm5, %v2379_v36 }
0x1466   :  { %1456 = vmatpush.msrb.mxu3 %v2346_v0 }
0x1468   :  { %1457 = vmatpush.msrb.mxu3 %v2352_v53 }
0x146a   :  { %1458 = vmatpush.msrb.mxu3 %v2357_v15 }
0x146c   :  { %1459 = vmatpush.msrb.mxu3 %v2363_v12 }
0x146d   :  { %1570 = vmatmul.msk.f32.vlgmr.msra.gmra.mxu3 %vm156_vm5, %v1277_v14 }
0x14c9   :  { %v1441_v35 = vpop.permute.xlu0 %1440 }
0x14ca   :  { %1475 = vst.msk [vmem:[#allocation10 + $0x4] sm:$0xf] %vm1466_vm7, %v1441_v35  ;;  %1577 = vmatmul.msk.f32.vlgmr.msrb.gmra.mxu3 %vm156_vm5, %v1441_v35 }
0x14cb   :  { %1496 = dma.vmem_to_hbm [thread:$0]  %s1489_s23, 128, %s1491_s26, [#allocation4], %s1896_s7, %s1896_s7, %s1901_s29  }
0x14e0   :  { %v969_v50 = vpop.f32.mrf.mxu3 }
0x14e1   :  { %v970_v51 = vadd.f32 %v969_v50, %v2388_v4 }
0x14e3   :  { %1557 = vst.msk [vmem:[%s2491_s9 + $0x10] sm:$0xf] %vm316_vm6, %v970_v51 }
0x14e8   :  { %v1133_v54 = vpop.f32.mrf.mxu3 }
0x14e9   :  { %v1134_v56 = vadd.f32 %v1133_v54, %v2388_v4 }
0x14eb   :  { %1564 = vst.msk [vmem:[%s2491_s9 + $0x14] sm:$0xf] %vm316_vm6, %v1134_v56 }
0x14f0   :  { %v1297_v57 = vpop.f32.mrf.mxu3 }
0x14f1   :  { %v1298_v48 = vadd.f32 %v1297_v57, %v2388_v4 }
0x14f3   :  { %1571 = vst.msk [vmem:[%s2491_s9 + $0x18] sm:$0xf] %vm316_vm6, %v1298_v48 }
0x154d   :  { %v1461_v61 = vpop.f32.mrf.mxu3 }
0x154e   :  { %v1462_v62 = vadd.f32 %v1461_v61, %v2388_v4 }
0x1550   :  { %1578 = vst.msk [vmem:[%s2491_s9 + $0x1c] sm:$0xf] %vm316_vm6, %v1462_v62 }
0x1551   :  { %1882 = dma.done.wait [#allocation4], 128  }
0x1552   :  { %1883 = vsyncadd [#allocation4], 4294967168 }
0x1553   :  { %1884 = dma.done.wait [#allocation12], 128  }
0x1554   :  { %1885 = vsyncadd [#allocation12], 4294967168 }
0x1555   :  { %1520 = vsyncpa [#allocation3], 1 }
0x1556   :  { %1521 = vsyncpa [#allocation6], 1 }
0x1557   :  { %1522 = vsyncpa [#allocation9], 1 }
0x1558   :  { %1523 = vsyncpa [#allocation4], 1 }
0x1559   :  { %1524 = vsyncpa [#allocation12], 1 }

</bundles_post_ra>
